<compile_context>
chip_gen: v7x
topology: tpu7x:2x2x1
jax: 0.10.0
libtpu: 0.0.40
codegen_flags: <defaults>
</compile_context>

<pallas_src>
import functools

import jax
import jax.numpy as jnp
from jax.experimental import pallas as pl
from jax.experimental.pallas import tpu as pltpu


# ----------------------------------------------------------------------------
# Helpers mirroring the PyTorch module's dependent functions
# ----------------------------------------------------------------------------
def get_same_padding(kernel_size):
    if isinstance(kernel_size, tuple):
        assert len(kernel_size) == 2
        return (get_same_padding(kernel_size[0]), get_same_padding(kernel_size[1]))
    assert isinstance(kernel_size, int)
    assert kernel_size % 2 > 0, 'kernel size should be odd number'
    return kernel_size // 2


def sub_filter_start_end(kernel_size, sub_kernel_size):
    center = kernel_size // 2
    dev = sub_kernel_size // 2
    start, end = center - dev, center + dev + 1
    assert end - start == sub_kernel_size
    return start, end


def _round_up(v, m):
    return -(-v // m) * m


def _sublane_pack(dtype):
    # packing granularity along the sublane axis: 8 for 4B, 16 for 2B, 32 for 1B
    return max(8, 32 // jnp.dtype(dtype).itemsize)


def _vmem_capacity_bytes():
    try:
        info = pltpu.get_tpu_info()
        cap = getattr(info, "vmem_capacity_bytes", None)
        if cap:
            return int(cap)
    except Exception:
        pass
    return 64 << 20          # conservative default (v7x per-core VMEM)


# ----------------------------------------------------------------------------
# Pallas kernel: one (group, batch-fold) step; row-tiled im2col + one matmul
# per row tile covering all folded batches.
# ----------------------------------------------------------------------------
def _grouped_conv_kernel(x_ref, w_ref, o_ref, slab_ref, *,
                         K, Wp, Qt, Ho_t, T, Nf, Cin_pad, dilation):
    # x_ref   : (Nf, Cin_pad, Lflat)     zero-padded flat images (spatial in lanes)
    # w_ref   : (Cout_pad, K*K*Cin_pad)  filters, row order (kh*K + kw)*Cin_pad + cin
    # o_ref   : (Nf, Cout_pad, T*Qt)     flat output tiles (lane-dense, 128-aligned)
    # slab_ref: (K*K*Cin_pad, Nf*Qt)     VMEM scratch im2col slab (one row tile)
    w = w_ref[...]                         # filter loaded once, reused for all tiles
    for t in range(T):                     # static unroll over output-row tiles
        row_off = t * Ho_t * Wp
        for n in range(Nf):                # static unroll over folded batches
            col0 = n * Qt
            for kh in range(K):
                for kw in range(K):
                    tap = kh * K + kw
                    off = row_off + (kh * Wp + kw) * dilation
                    slab_ref[pl.ds(tap * Cin_pad, Cin_pad),
                             pl.ds(col0, Qt)] = x_ref[n, :, pl.ds(off, Qt)]
        # One MXU matmul per row tile: Nf*Qt lane columns streamed through the small
        # stationary filter operand; fp32 accumulation.
        res = jnp.dot(w, slab_ref[...],
                      preferred_element_type=jnp.float32).astype(o_ref.dtype)
        for n in range(Nf):
            o_ref[n, :, pl.ds(t * Qt, Qt)] = res[:, n * Qt:(n + 1) * Qt]


def grouped_conv2d_same(x_nchw, filters, groups, stride=1, dilation=1,
                        compute_dtype=None, row_tile=None, batch_fold=None):
    """Grouped conv2d, 'same' padding. x: NCHW, filters: (Cout, Cin/groups, K, K)."""
    N, Cin, H, W = x_nchw.shape
    Cout, Cin_g, K, K2 = filters.shape
    assert K == K2 and Cin_g == Cin // groups and Cout % groups == 0
    # TODO(synk): stride > 1 needs the stride moved to the row axis (per-row copies);
    # the flat lane-offset trick below covers stride == 1 (the module default) only.
    assert stride == 1, "Pallas grouped_conv2d_same implements stride=1 only"
    Cout_g = Cout // groups
    out_dtype = x_nchw.dtype
    compute_dtype = jnp.dtype(out_dtype if compute_dtype is None else compute_dtype)
    c_item = compute_dtype.itemsize
    o_item = jnp.dtype(out_dtype).itemsize

    pad = get_same_padding(K)
    Hp, Wp = H + 2 * pad, W + 2 * pad
    Ho = (Hp - dilation * (K - 1) - 1) // stride + 1
    Wo = (Wp - dilation * (K - 1) - 1) // stride + 1

    Cin_pad = _round_up(Cin_g, _sublane_pack(compute_dtype))   # packed-aligned taps
    Cout_pad = _round_up(Cout_g, _sublane_pack(out_dtype))     # full-sublane output
    KKC_pad = K * K * Cin_pad

    # ---- VMEM-budgeted choice of batch fold (Nf) and output-row tile (Ho_t) ----
    cap = _vmem_capacity_bytes()
    budget = max(8 << 20, int(cap * 3 // 8))      # ~24 MiB on v7x, ~48 MiB on v5e/v6e

    def plan(ho_t, nf):
        T = -(-Ho // ho_t)
        qt = _round_up(ho_t * Wp, 128)            # lane-dense (128-aligned) tile cols
        need = (T - 1) * ho_t * Wp + (K - 1) * dilation * (Wp + 1) + qt
        extra = max(0, -(-(need - Hp * Wp) // Wp))
        lflat = (Hp + extra) * Wp
        foot = (2 * nf * Cin_pad * lflat * c_item          # double-buffered input
                + 2 * Cout_pad * KKC_pad * c_item          # filter block
                + 2 * nf * Cout_pad * T * qt * o_item      # double-buffered output
                + KKC_pad * nf * qt * c_item)              # im2col slab scratch
        return T, qt, lflat, foot

    ho_probe = Ho if row_tile is None else max(1, min(int(row_tile), Ho))
    if batch_fold is not None:
        Nf = max(1, min(int(batch_fold), N))
    else:
        Nf = min(N, 8)                            # cap the static unroll
        while Nf > 1 and plan(1 if row_tile is None else ho_probe, Nf)[3] > budget:
            Nf -= 1
    if row_tile is not None:
        Ho_t = ho_probe
    else:
        Ho_t = Ho
        while Ho_t > 1 and plan(Ho_t, Nf)[3] > budget:
            Ho_t = max(1, Ho_t // 2)
    T, Qt, Lflat, foot = plan(Ho_t, Nf)
    vmem_limit = int(max(32 << 20, min(int(cap * 0.9), 2 * foot + (8 << 20))))

    N_pad = _round_up(N, Nf)
    B_outer = N_pad // Nf

    # ---- host layout: NCHW -> (B_outer, Nf, G, Cin_pad, Lflat), spatial in lanes ----
    extra_rows = Lflat // Wp - Hp
    x5 = x_nchw.astype(compute_dtype).reshape(N, groups, Cin_g, H, W)
    x5 = jnp.pad(x5, ((0, N_pad - N), (0, 0), (0, Cin_pad - Cin_g),
                      (pad, pad + extra_rows), (pad, pad)))
    x_flat = x5.reshape(B_outer, Nf, groups, Cin_pad, Lflat)

    # (Cout, Cin_g, K, K) -> (G, Cout_pad, K*K*Cin_pad): tap-major then cin, zero-padded
    w5 = (filters.astype(compute_dtype)
          .reshape(groups, Cout_g, Cin_g, K, K)
          .transpose(0, 1, 3, 4, 2))                        # (G, Cout_g, K, K, Cin_g)
    w5 = jnp.pad(w5, ((0, 0), (0, Cout_pad - Cout_g), (0, 0), (0, 0),
                      (0, Cin_pad - Cin_g)))
    w_mat = w5.reshape(groups, Cout_pad, KKC_pad)

    kern = functools.partial(_grouped_conv_kernel, K=K, Wp=Wp, Qt=Qt, Ho_t=Ho_t,
                             T=T, Nf=Nf, Cin_pad=Cin_pad, dilation=dilation)

    out_raw = pl.pallas_call(
        kern,
        out_shape=jax.ShapeDtypeStruct((B_outer, Nf, groups, Cout_pad, T * Qt),
                                       out_dtype),
        grid=(groups, B_outer),   # batch-fold innermost -> filter block constant
        in_specs=[
            pl.BlockSpec((None, Nf, None, Cin_pad, Lflat),
                         lambda g, b: (b, 0, g, 0, 0)),
            pl.BlockSpec((None, Cout_pad, KKC_pad), lambda g, b: (g, 0, 0)),
        ],
        out_specs=pl.BlockSpec((None, Nf, None, Cout_pad, T * Qt),
                               lambda g, b: (b, 0, g, 0, 0)),
        scratch_shapes=[pltpu.VMEM((KKC_pad, Nf * Qt), compute_dtype)],
        compiler_params=pltpu.CompilerParams(
            dimension_semantics=("parallel", "parallel"),
            vmem_limit_bytes=vmem_limit),
    )(x_flat, w_mat)

    # ---- crop padding (pure reshapes + slices, no transpose) ----
    out = out_raw.reshape(N_pad, groups, Cout_pad, T, Qt)[:N, :, :Cout_g, :, :Ho_t * Wp]
    out = out.reshape(N, groups, Cout_g, T, Ho_t, Wp)[..., :Wo]
    out = out.reshape(N, groups, Cout_g, T * Ho_t, Wo)[:, :, :, :Ho]
    return out.reshape(N, Cout, Ho, Wo)


# ----------------------------------------------------------------------------
# DynamicGroupConv2d (JAX / Pallas)
# ----------------------------------------------------------------------------
class DynamicGroupConv2d:
    def __init__(self, in_channels, out_channels, kernel_size_list,
                 stride=1, dilation=1, groups_list=(1,), bias=False):
        self.in_channels = in_channels
        self.out_channels = out_channels
        self.kernel_size_list = list(kernel_size_list)
        self.groups_list = list(groups_list)
        self.stride = stride
        self.dilation = dilation
        self.active_kernel_size = max(self.kernel_size_list)
        self.active_groups = min(self.groups_list)
        kmax = max(self.kernel_size_list)
        wshape = (out_channels, in_channels // min(self.groups_list), kmax, kmax)
        key = jax.random.PRNGKey(0)
        fan_in = wshape[1] * kmax * kmax
        bound = 1.0 / (fan_in ** 0.5)
        self.weight = jax.random.uniform(
            key, wshape, jnp.float32, minval=-bound, maxval=bound)
        # TODO(synk): reference get_active_bias reads undefined self.bias when bias=False;
        # bias is always False here, so no bias term is applied (matches the spec).

    def get_active_filter(self, kernel_size, groups):
        kmax = max(self.kernel_size_list)
        start, end = sub_filter_start_end(kmax, kernel_size)
        filters = self.weight[:, :, start:end, start:end]
        sub_filters = jnp.split(filters, groups, axis=0)          # torch.chunk over dim 0
        sub_in_channels = self.in_channels // groups
        sub_ratio = filters.shape[1] // sub_in_channels
        crops = []
        for i, sf in enumerate(sub_filters):
            part_id = i % sub_ratio
            s = part_id * sub_in_channels
            crops.append(sf[:, s:s + sub_in_channels, :, :])
        return jnp.concatenate(crops, axis=0)                     # (Cout, Cin/g, k, k)

    def __call__(self, x, kernel_size=None, groups=None, compute_dtype=None):
        if kernel_size is None:
            kernel_size = self.active_kernel_size
        if groups is None:
            groups = self.active_groups
        filters = self.get_active_filter(kernel_size, groups)
        return grouped_conv2d_same(
            x, filters, groups, stride=self.stride, dilation=self.dilation,
            compute_dtype=compute_dtype)


# ----------------------------------------------------------------------------
# Main: deterministic inputs, run, verify against lax reference
# ----------------------------------------------------------------------------
def _lax_reference(x, filters, groups, stride, dilation, pad):
    return jax.lax.conv_general_dilated(
        x, filters,
        window_strides=(stride, stride),
        padding=((pad, pad), (pad, pad)),
        rhs_dilation=(dilation, dilation),
        dimension_numbers=('NCHW', 'OIHW', 'NCHW'),
        feature_group_count=groups,
    )


if __name__ == "__main__":
    key = jax.random.PRNGKey(0)
    N, Cin, H, W = 2, 8, 16, 16
    Cout = 8
    x = jax.random.normal(key, (N, Cin, H, W), jnp.float32)

    mod = DynamicGroupConv2d(
        in_channels=Cin, out_channels=Cout,
        kernel_size_list=[3, 5], groups_list=[1, 2],
        stride=1, dilation=1, bias=False,
    )

    # 1) default active config: kernel_size=5, groups=1 (fp32, batch-folded, 1 tile)
    y0 = jax.block_until_ready(mod(x))
    f0 = mod.get_active_filter(5, 1)
    r0 = _lax_reference(x, f0, 1, 1, 1, get_same_padding(5))
    assert y0.shape == (N, Cout, H, W)
    assert jnp.allclose(y0, r0, rtol=1e-4, atol=1e-4)

    # 2) dynamic config: kernel_size=3, groups=2 (fp32)
    y1 = jax.block_until_ready(mod(x, kernel_size=3, groups=2))
    f1 = mod.get_active_filter(3, 2)
    r1 = _lax_reference(x, f1, 2, 1, 1, get_same_padding(3))
    assert y1.shape == (N, Cout, H, W)
    assert jnp.allclose(y1, r1, rtol=1e-4, atol=1e-4)

    # 3) forced row-tiling path (no batch fold, 4 row tiles) — the scalable code path
    y2 = jax.block_until_ready(
        grouped_conv2d_same(x, f0, 1, row_tile=5, batch_fold=1))
    assert y2.shape == (N, Cout, H, W)
    assert jnp.allclose(y2, r0, rtol=1e-4, atol=1e-4)

    # 4) bf16 MXU operands with fp32 accumulation, loose tolerance
    y3 = jax.block_until_ready(
        grouped_conv2d_same(x, f0, 1, compute_dtype=jnp.bfloat16))
    assert y3.shape == (N, Cout, H, W)
    assert jnp.allclose(y3.astype(jnp.float32), r0, rtol=1e-1, atol=1e-1)

    print("KERNEL_OK")
</pallas_src>

<mosaic_0001>
module attributes {stable_mosaic.version = 11 : i64} {
  func.func @_grouped_conv_kernel(%arg0: i32, %arg1: i32, %arg2: memref<1x2x1x8x480xf32, #tpu.memory_space<vmem>>, %arg3: memref<1x8x200xf32, #tpu.memory_space<vmem>>, %arg4: memref<1x2x1x8x384xf32, #tpu.memory_space<vmem>>, %arg5: memref<200x768xf32, #tpu.memory_space<vmem>>) attributes {dimension_semantics = [#tpu.dimension_semantics<parallel>, #tpu.dimension_semantics<parallel>], iteration_bounds = array<i64: 1, 1>, scalar_prefetch = 0 : i64, scratch_operands = 1 : i64, tpu.core_type = #tpu.core_type<tc>, window_params = [{transform_indices = @transform_0, window_bounds = array<i64: 1, 2, 1, 8, 480>}, {transform_indices = @transform_1, window_bounds = array<i64: 1, 8, 200>}, {transform_indices = @transform_2, window_bounds = array<i64: 1, 2, 1, 8, 384>}]} {
    %c0 = arith.constant 0 : index
    %c0_0 = arith.constant 0 : index
    %c0_1 = arith.constant 0 : index
    %0 = vector.load %arg3[%c0, %c0_0, %c0_1] : memref<1x8x200xf32, #tpu.memory_space<vmem>>, vector<1x8x200xf32>
    %1 = vector.shape_cast %0 : vector<1x8x200xf32> to vector<8x200xf32>
    %c0_2 = arith.constant 0 : index
    %c0_3 = arith.constant 0 : index
    %c0_4 = arith.constant 0 : index
    %c0_5 = arith.constant 0 : index
    %c0_6 = arith.constant 0 : index
    %2 = vector.load %arg2[%c0_2, %c0_3, %c0_4, %c0_5, %c0_6] : memref<1x2x1x8x480xf32, #tpu.memory_space<vmem>>, vector<1x1x1x8x384xf32>
    %3 = vector.shape_cast %2 : vector<1x1x1x8x384xf32> to vector<8x384xf32>
    %c0_7 = arith.constant 0 : index
    %c0_8 = arith.constant 0 : index
    %4 = vector.load %arg5[%c0_7, %c0_8] : memref<200x768xf32, #tpu.memory_space<vmem>>, vector<8x384xf32>
    tpu.vector_store %arg5[%c0_7, %c0_8], %3 {strides = array<i32>} : memref<200x768xf32, #tpu.memory_space<vmem>>, vector<8x384xf32>,
    %c0_9 = arith.constant 0 : index
    %c0_10 = arith.constant 0 : index
    %c0_11 = arith.constant 0 : index
    %c0_12 = arith.constant 0 : index
    %c1 = arith.constant 1 : index
    %5 = vector.load %arg2[%c0_9, %c0_10, %c0_11, %c0_12, %c1] : memref<1x2x1x8x480xf32, #tpu.memory_space<vmem>>, vector<1x1x1x8x384xf32>
    %6 = vector.shape_cast %5 : vector<1x1x1x8x384xf32> to vector<8x384xf32>
    %c8 = arith.constant 8 : index
    %c0_13 = arith.constant 0 : index
    %7 = vector.load %arg5[%c8, %c0_13] : memref<200x768xf32, #tpu.memory_space<vmem>>, vector<8x384xf32>
    tpu.vector_store %arg5[%c8, %c0_13], %6 {strides = array<i32>} : memref<200x768xf32, #tpu.memory_space<vmem>>, vector<8x384xf32>,
    %c0_14 = arith.constant 0 : index
    %c0_15 = arith.constant 0 : index
    %c0_16 = arith.constant 0 : index
    %c0_17 = arith.constant 0 : index
    %c2 = arith.constant 2 : index
    %8 = vector.load %arg2[%c0_14, %c0_15, %c0_16, %c0_17, %c2] : memref<1x2x1x8x480xf32, #tpu.memory_space<vmem>>, vector<1x1x1x8x384xf32>
    %9 = vector.shape_cast %8 : vector<1x1x1x8x384xf32> to vector<8x384xf32>
    %c16 = arith.constant 16 : index
    %c0_18 = arith.constant 0 : index
    %10 = vector.load %arg5[%c16, %c0_18] : memref<200x768xf32, #tpu.memory_space<vmem>>, vector<8x384xf32>
    tpu.vector_store %arg5[%c16, %c0_18], %9 {strides = array<i32>} : memref<200x768xf32, #tpu.memory_space<vmem>>, vector<8x384xf32>,
    %c0_19 = arith.constant 0 : index
    %c0_20 = arith.constant 0 : index
    %c0_21 = arith.constant 0 : index
    %c0_22 = arith.constant 0 : index
    %c3 = arith.constant 3 : index
    %11 = vector.load %arg2[%c0_19, %c0_20, %c0_21, %c0_22, %c3] : memref<1x2x1x8x480xf32, #tpu.memory_space<vmem>>, vector<1x1x1x8x384xf32>
    %12 = vector.shape_cast %11 : vector<1x1x1x8x384xf32> to vector<8x384xf32>
    %c24 = arith.constant 24 : index
    %c0_23 = arith.constant 0 : index
    %13 = vector.load %arg5[%c24, %c0_23] : memref<200x768xf32, #tpu.memory_space<vmem>>, vector<8x384xf32>
    tpu.vector_store %arg5[%c24, %c0_23], %12 {strides = array<i32>} : memref<200x768xf32, #tpu.memory_space<vmem>>, vector<8x384xf32>,
    %c0_24 = arith.constant 0 : index
    %c0_25 = arith.constant 0 : index
    %c0_26 = arith.constant 0 : index
    %c0_27 = arith.constant 0 : index
    %c4 = arith.constant 4 : index
    %14 = vector.load %arg2[%c0_24, %c0_25, %c0_26, %c0_27, %c4] : memref<1x2x1x8x480xf32, #tpu.memory_space<vmem>>, vector<1x1x1x8x384xf32>
    %15 = vector.shape_cast %14 : vector<1x1x1x8x384xf32> to vector<8x384xf32>
    %c32 = arith.constant 32 : index
    %c0_28 = arith.constant 0 : index
    %16 = vector.load %arg5[%c32, %c0_28] : memref<200x768xf32, #tpu.memory_space<vmem>>, vector<8x384xf32>
    tpu.vector_store %arg5[%c32, %c0_28], %15 {strides = array<i32>} : memref<200x768xf32, #tpu.memory_space<vmem>>, vector<8x384xf32>,
    %c0_29 = arith.constant 0 : index
    %c0_30 = arith.constant 0 : index
    %c0_31 = arith.constant 0 : index
    %c0_32 = arith.constant 0 : index
    %c20 = arith.constant 20 : index
    %17 = vector.load %arg2[%c0_29, %c0_30, %c0_31, %c0_32, %c20] : memref<1x2x1x8x480xf32, #tpu.memory_space<vmem>>, vector<1x1x1x8x384xf32>
    %18 = vector.shape_cast %17 : vector<1x1x1x8x384xf32> to vector<8x384xf32>
    %c40 = arith.constant 40 : index
    %c0_33 = arith.constant 0 : index
    %19 = vector.load %arg5[%c40, %c0_33] : memref<200x768xf32, #tpu.memory_space<vmem>>, vector<8x384xf32>
    tpu.vector_store %arg5[%c40, %c0_33], %18 {strides = array<i32>} : memref<200x768xf32, #tpu.memory_space<vmem>>, vector<8x384xf32>,
    %c0_34 = arith.constant 0 : index
    %c0_35 = arith.constant 0 : index
    %c0_36 = arith.constant 0 : index
    %c0_37 = arith.constant 0 : index
    %c21 = arith.constant 21 : index
    %20 = vector.load %arg2[%c0_34, %c0_35, %c0_36, %c0_37, %c21] : memref<1x2x1x8x480xf32, #tpu.memory_space<vmem>>, vector<1x1x1x8x384xf32>
    %21 = vector.shape_cast %20 : vector<1x1x1x8x384xf32> to vector<8x384xf32>
    %c48 = arith.constant 48 : index
    %c0_38 = arith.constant 0 : index
    %22 = vector.load %arg5[%c48, %c0_38] : memref<200x768xf32, #tpu.memory_space<vmem>>, vector<8x384xf32>
    tpu.vector_store %arg5[%c48, %c0_38], %21 {strides = array<i32>} : memref<200x768xf32, #tpu.memory_space<vmem>>, vector<8x384xf32>,
    %c0_39 = arith.constant 0 : index
    %c0_40 = arith.constant 0 : index
    %c0_41 = arith.constant 0 : index
    %c0_42 = arith.constant 0 : index
    %c22 = arith.constant 22 : index
    %23 = vector.load %arg2[%c0_39, %c0_40, %c0_41, %c0_42, %c22] : memref<1x2x1x8x480xf32, #tpu.memory_space<vmem>>, vector<1x1x1x8x384xf32>
    %24 = vector.shape_cast %23 : vector<1x1x1x8x384xf32> to vector<8x384xf32>
    %c56 = arith.constant 56 : index
    %c0_43 = arith.constant 0 : index
    %25 = vector.load %arg5[%c56, %c0_43] : memref<200x768xf32, #tpu.memory_space<vmem>>, vector<8x384xf32>
    tpu.vector_store %arg5[%c56, %c0_43], %24 {strides = array<i32>} : memref<200x768xf32, #tpu.memory_space<vmem>>, vector<8x384xf32>,
    %c0_44 = arith.constant 0 : index
    %c0_45 = arith.constant 0 : index
    %c0_46 = arith.constant 0 : index
    %c0_47 = arith.constant 0 : index
    %c23 = arith.constant 23 : index
    %26 = vector.load %arg2[%c0_44, %c0_45, %c0_46, %c0_47, %c23] : memref<1x2x1x8x480xf32, #tpu.memory_space<vmem>>, vector<1x1x1x8x384xf32>
    %27 = vector.shape_cast %26 : vector<1x1x1x8x384xf32> to vector<8x384xf32>
    %c64 = arith.constant 64 : index
    %c0_48 = arith.constant 0 : index
    %28 = vector.load %arg5[%c64, %c0_48] : memref<200x768xf32, #tpu.memory_space<vmem>>, vector<8x384xf32>
    tpu.vector_store %arg5[%c64, %c0_48], %27 {strides = array<i32>} : memref<200x768xf32, #tpu.memory_space<vmem>>, vector<8x384xf32>,
    %c0_49 = arith.constant 0 : index
    %c0_50 = arith.constant 0 : index
    %c0_51 = arith.constant 0 : index
    %c0_52 = arith.constant 0 : index
    %c24_53 = arith.constant 24 : index
    %29 = vector.load %arg2[%c0_49, %c0_50, %c0_51, %c0_52, %c24_53] : memref<1x2x1x8x480xf32, #tpu.memory_space<vmem>>, vector<1x1x1x8x384xf32>
    %30 = vector.shape_cast %29 : vector<1x1x1x8x384xf32> to vector<8x384xf32>
    %c72 = arith.constant 72 : index
    %c0_54 = arith.constant 0 : index
    %31 = vector.load %arg5[%c72, %c0_54] : memref<200x768xf32, #tpu.memory_space<vmem>>, vector<8x384xf32>
    tpu.vector_store %arg5[%c72, %c0_54], %30 {strides = array<i32>} : memref<200x768xf32, #tpu.memory_space<vmem>>, vector<8x384xf32>,
    %c0_55 = arith.constant 0 : index
    %c0_56 = arith.constant 0 : index
    %c0_57 = arith.constant 0 : index
    %c0_58 = arith.constant 0 : index
    %c40_59 = arith.constant 40 : index
    %32 = vector.load %arg2[%c0_55, %c0_56, %c0_57, %c0_58, %c40_59] : memref<1x2x1x8x480xf32, #tpu.memory_space<vmem>>, vector<1x1x1x8x384xf32>
    %33 = vector.shape_cast %32 : vector<1x1x1x8x384xf32> to vector<8x384xf32>
    %c80 = arith.constant 80 : index
    %c0_60 = arith.constant 0 : index
    %34 = vector.load %arg5[%c80, %c0_60] : memref<200x768xf32, #tpu.memory_space<vmem>>, vector<8x384xf32>
    tpu.vector_store %arg5[%c80, %c0_60], %33 {strides = array<i32>} : memref<200x768xf32, #tpu.memory_space<vmem>>, vector<8x384xf32>,
    %c0_61 = arith.constant 0 : index
    %c0_62 = arith.constant 0 : index
    %c0_63 = arith.constant 0 : index
    %c0_64 = arith.constant 0 : index
    %c41 = arith.constant 41 : index
    %35 = vector.load %arg2[%c0_61, %c0_62, %c0_63, %c0_64, %c41] : memref<1x2x1x8x480xf32, #tpu.memory_space<vmem>>, vector<1x1x1x8x384xf32>
    %36 = vector.shape_cast %35 : vector<1x1x1x8x384xf32> to vector<8x384xf32>
    %c88 = arith.constant 88 : index
    %c0_65 = arith.constant 0 : index
    %37 = vector.load %arg5[%c88, %c0_65] : memref<200x768xf32, #tpu.memory_space<vmem>>, vector<8x384xf32>
    tpu.vector_store %arg5[%c88, %c0_65], %36 {strides = array<i32>} : memref<200x768xf32, #tpu.memory_space<vmem>>, vector<8x384xf32>,
    %c0_66 = arith.constant 0 : index
    %c0_67 = arith.constant 0 : index
    %c0_68 = arith.constant 0 : index
    %c0_69 = arith.constant 0 : index
    %c42 = arith.constant 42 : index
    %38 = vector.load %arg2[%c0_66, %c0_67, %c0_68, %c0_69, %c42] : memref<1x2x1x8x480xf32, #tpu.memory_space<vmem>>, vector<1x1x1x8x384xf32>
    %39 = vector.shape_cast %38 : vector<1x1x1x8x384xf32> to vector<8x384xf32>
    %c96 = arith.constant 96 : index
    %c0_70 = arith.constant 0 : index
    %40 = vector.load %arg5[%c96, %c0_70] : memref<200x768xf32, #tpu.memory_space<vmem>>, vector<8x384xf32>
    tpu.vector_store %arg5[%c96, %c0_70], %39 {strides = array<i32>} : memref<200x768xf32, #tpu.memory_space<vmem>>, vector<8x384xf32>,
    %c0_71 = arith.constant 0 : index
    %c0_72 = arith.constant 0 : index
    %c0_73 = arith.constant 0 : index
    %c0_74 = arith.constant 0 : index
    %c43 = arith.constant 43 : index
    %41 = vector.load %arg2[%c0_71, %c0_72, %c0_73, %c0_74, %c43] : memref<1x2x1x8x480xf32, #tpu.memory_space<vmem>>, vector<1x1x1x8x384xf32>
    %42 = vector.shape_cast %41 : vector<1x1x1x8x384xf32> to vector<8x384xf32>
    %c104 = arith.constant 104 : index
    %c0_75 = arith.constant 0 : index
    %43 = vector.load %arg5[%c104, %c0_75] : memref<200x768xf32, #tpu.memory_space<vmem>>, vector<8x384xf32>
    tpu.vector_store %arg5[%c104, %c0_75], %42 {strides = array<i32>} : memref<200x768xf32, #tpu.memory_space<vmem>>, vector<8x384xf32>,
    %c0_76 = arith.constant 0 : index
    %c0_77 = arith.constant 0 : index
    %c0_78 = arith.constant 0 : index
    %c0_79 = arith.constant 0 : index
    %c44 = arith.constant 44 : index
    %44 = vector.load %arg2[%c0_76, %c0_77, %c0_78, %c0_79, %c44] : memref<1x2x1x8x480xf32, #tpu.memory_space<vmem>>, vector<1x1x1x8x384xf32>
    %45 = vector.shape_cast %44 : vector<1x1x1x8x384xf32> to vector<8x384xf32>
    %c112 = arith.constant 112 : index
    %c0_80 = arith.constant 0 : index
    %46 = vector.load %arg5[%c112, %c0_80] : memref<200x768xf32, #tpu.memory_space<vmem>>, vector<8x384xf32>
    tpu.vector_store %arg5[%c112, %c0_80], %45 {strides = array<i32>} : memref<200x768xf32, #tpu.memory_space<vmem>>, vector<8x384xf32>,
    %c0_81 = arith.constant 0 : index
    %c0_82 = arith.constant 0 : index
    %c0_83 = arith.constant 0 : index
    %c0_84 = arith.constant 0 : index
    %c60 = arith.constant 60 : index
    %47 = vector.load %arg2[%c0_81, %c0_82, %c0_83, %c0_84, %c60] : memref<1x2x1x8x480xf32, #tpu.memory_space<vmem>>, vector<1x1x1x8x384xf32>
    %48 = vector.shape_cast %47 : vector<1x1x1x8x384xf32> to vector<8x384xf32>
    %c120 = arith.constant 120 : index
    %c0_85 = arith.constant 0 : index
    %49 = vector.load %arg5[%c120, %c0_85] : memref<200x768xf32, #tpu.memory_space<vmem>>, vector<8x384xf32>
    tpu.vector_store %arg5[%c120, %c0_85], %48 {strides = array<i32>} : memref<200x768xf32, #tpu.memory_space<vmem>>, vector<8x384xf32>,
    %c0_86 = arith.constant 0 : index
    %c0_87 = arith.constant 0 : index
    %c0_88 = arith.constant 0 : index
    %c0_89 = arith.constant 0 : index
    %c61 = arith.constant 61 : index
    %50 = vector.load %arg2[%c0_86, %c0_87, %c0_88, %c0_89, %c61] : memref<1x2x1x8x480xf32, #tpu.memory_space<vmem>>, vector<1x1x1x8x384xf32>
    %51 = vector.shape_cast %50 : vector<1x1x1x8x384xf32> to vector<8x384xf32>
    %c128 = arith.constant 128 : index
    %c0_90 = arith.constant 0 : index
    %52 = vector.load %arg5[%c128, %c0_90] : memref<200x768xf32, #tpu.memory_space<vmem>>, vector<8x384xf32>
    tpu.vector_store %arg5[%c128, %c0_90], %51 {strides = array<i32>} : memref<200x768xf32, #tpu.memory_space<vmem>>, vector<8x384xf32>,
    %c0_91 = arith.constant 0 : index
    %c0_92 = arith.constant 0 : index
    %c0_93 = arith.constant 0 : index
    %c0_94 = arith.constant 0 : index
    %c62 = arith.constant 62 : index
    %53 = vector.load %arg2[%c0_91, %c0_92, %c0_93, %c0_94, %c62] : memref<1x2x1x8x480xf32, #tpu.memory_space<vmem>>, vector<1x1x1x8x384xf32>
    %54 = vector.shape_cast %53 : vector<1x1x1x8x384xf32> to vector<8x384xf32>
    %c136 = arith.constant 136 : index
    %c0_95 = arith.constant 0 : index
    %55 = vector.load %arg5[%c136, %c0_95] : memref<200x768xf32, #tpu.memory_space<vmem>>, vector<8x384xf32>
    tpu.vector_store %arg5[%c136, %c0_95], %54 {strides = array<i32>} : memref<200x768xf32, #tpu.memory_space<vmem>>, vector<8x384xf32>,
    %c0_96 = arith.constant 0 : index
    %c0_97 = arith.constant 0 : index
    %c0_98 = arith.constant 0 : index
    %c0_99 = arith.constant 0 : index
    %c63 = arith.constant 63 : index
    %56 = vector.load %arg2[%c0_96, %c0_97, %c0_98, %c0_99, %c63] : memref<1x2x1x8x480xf32, #tpu.memory_space<vmem>>, vector<1x1x1x8x384xf32>
    %57 = vector.shape_cast %56 : vector<1x1x1x8x384xf32> to vector<8x384xf32>
    %c144 = arith.constant 144 : index
    %c0_100 = arith.constant 0 : index
    %58 = vector.load %arg5[%c144, %c0_100] : memref<200x768xf32, #tpu.memory_space<vmem>>, vector<8x384xf32>
    tpu.vector_store %arg5[%c144, %c0_100], %57 {strides = array<i32>} : memref<200x768xf32, #tpu.memory_space<vmem>>, vector<8x384xf32>,
    %c0_101 = arith.constant 0 : index
    %c0_102 = arith.constant 0 : index
    %c0_103 = arith.constant 0 : index
    %c0_104 = arith.constant 0 : index
    %c64_105 = arith.constant 64 : index
    %59 = vector.load %arg2[%c0_101, %c0_102, %c0_103, %c0_104, %c64_105] : memref<1x2x1x8x480xf32, #tpu.memory_space<vmem>>, vector<1x1x1x8x384xf32>
    %60 = vector.shape_cast %59 : vector<1x1x1x8x384xf32> to vector<8x384xf32>
    %c152 = arith.constant 152 : index
    %c0_106 = arith.constant 0 : index
    %61 = vector.load %arg5[%c152, %c0_106] : memref<200x768xf32, #tpu.memory_space<vmem>>, vector<8x384xf32>
    tpu.vector_store %arg5[%c152, %c0_106], %60 {strides = array<i32>} : memref<200x768xf32, #tpu.memory_space<vmem>>, vector<8x384xf32>,
    %c0_107 = arith.constant 0 : index
    %c0_108 = arith.constant 0 : index
    %c0_109 = arith.constant 0 : index
    %c0_110 = arith.constant 0 : index
    %c80_111 = arith.constant 80 : index
    %62 = vector.load %arg2[%c0_107, %c0_108, %c0_109, %c0_110, %c80_111] : memref<1x2x1x8x480xf32, #tpu.memory_space<vmem>>, vector<1x1x1x8x384xf32>
    %63 = vector.shape_cast %62 : vector<1x1x1x8x384xf32> to vector<8x384xf32>
    %c160 = arith.constant 160 : index
    %c0_112 = arith.constant 0 : index
    %64 = vector.load %arg5[%c160, %c0_112] : memref<200x768xf32, #tpu.memory_space<vmem>>, vector<8x384xf32>
    tpu.vector_store %arg5[%c160, %c0_112], %63 {strides = array<i32>} : memref<200x768xf32, #tpu.memory_space<vmem>>, vector<8x384xf32>,
    %c0_113 = arith.constant 0 : index
    %c0_114 = arith.constant 0 : index
    %c0_115 = arith.constant 0 : index
    %c0_116 = arith.constant 0 : index
    %c81 = arith.constant 81 : index
    %65 = vector.load %arg2[%c0_113, %c0_114, %c0_115, %c0_116, %c81] : memref<1x2x1x8x480xf32, #tpu.memory_space<vmem>>, vector<1x1x1x8x384xf32>
    %66 = vector.shape_cast %65 : vector<1x1x1x8x384xf32> to vector<8x384xf32>
    %c168 = arith.constant 168 : index
    %c0_117 = arith.constant 0 : index
    %67 = vector.load %arg5[%c168, %c0_117] : memref<200x768xf32, #tpu.memory_space<vmem>>, vector<8x384xf32>
    tpu.vector_store %arg5[%c168, %c0_117], %66 {strides = array<i32>} : memref<200x768xf32, #tpu.memory_space<vmem>>, vector<8x384xf32>,
    %c0_118 = arith.constant 0 : index
    %c0_119 = arith.constant 0 : index
    %c0_120 = arith.constant 0 : index
    %c0_121 = arith.constant 0 : index
    %c82 = arith.constant 82 : index
    %68 = vector.load %arg2[%c0_118, %c0_119, %c0_120, %c0_121, %c82] : memref<1x2x1x8x480xf32, #tpu.memory_space<vmem>>, vector<1x1x1x8x384xf32>
    %69 = vector.shape_cast %68 : vector<1x1x1x8x384xf32> to vector<8x384xf32>
    %c176 = arith.constant 176 : index
    %c0_122 = arith.constant 0 : index
    %70 = vector.load %arg5[%c176, %c0_122] : memref<200x768xf32, #tpu.memory_space<vmem>>, vector<8x384xf32>
    tpu.vector_store %arg5[%c176, %c0_122], %69 {strides = array<i32>} : memref<200x768xf32, #tpu.memory_space<vmem>>, vector<8x384xf32>,
    %c0_123 = arith.constant 0 : index
    %c0_124 = arith.constant 0 : index
    %c0_125 = arith.constant 0 : index
    %c0_126 = arith.constant 0 : index
    %c83 = arith.constant 83 : index
    %71 = vector.load %arg2[%c0_123, %c0_124, %c0_125, %c0_126, %c83] : memref<1x2x1x8x480xf32, #tpu.memory_space<vmem>>, vector<1x1x1x8x384xf32>
    %72 = vector.shape_cast %71 : vector<1x1x1x8x384xf32> to vector<8x384xf32>
    %c184 = arith.constant 184 : index
    %c0_127 = arith.constant 0 : index
    %73 = vector.load %arg5[%c184, %c0_127] : memref<200x768xf32, #tpu.memory_space<vmem>>, vector<8x384xf32>
    tpu.vector_store %arg5[%c184, %c0_127], %72 {strides = array<i32>} : memref<200x768xf32, #tpu.memory_space<vmem>>, vector<8x384xf32>,
    %c0_128 = arith.constant 0 : index
    %c0_129 = arith.constant 0 : index
    %c0_130 = arith.constant 0 : index
    %c0_131 = arith.constant 0 : index
    %c84 = arith.constant 84 : index
    %74 = vector.load %arg2[%c0_128, %c0_129, %c0_130, %c0_131, %c84] : memref<1x2x1x8x480xf32, #tpu.memory_space<vmem>>, vector<1x1x1x8x384xf32>
    %75 = vector.shape_cast %74 : vector<1x1x1x8x384xf32> to vector<8x384xf32>
    %c192 = arith.constant 192 : index
    %c0_132 = arith.constant 0 : index
    %76 = vector.load %arg5[%c192, %c0_132] : memref<200x768xf32, #tpu.memory_space<vmem>>, vector<8x384xf32>
    tpu.vector_store %arg5[%c192, %c0_132], %75 {strides = array<i32>} : memref<200x768xf32, #tpu.memory_space<vmem>>, vector<8x384xf32>,
    %c0_133 = arith.constant 0 : index
    %c1_134 = arith.constant 1 : index
    %c0_135 = arith.constant 0 : index
    %c0_136 = arith.constant 0 : index
    %c0_137 = arith.constant 0 : index
    %77 = vector.load %arg2[%c0_133, %c1_134, %c0_135, %c0_136, %c0_137] : memref<1x2x1x8x480xf32, #tpu.memory_space<vmem>>, vector<1x1x1x8x384xf32>
    %78 = vector.shape_cast %77 : vector<1x1x1x8x384xf32> to vector<8x384xf32>
    %c0_138 = arith.constant 0 : index
    %c384 = arith.constant 384 : index
    %79 = vector.load %arg5[%c0_138, %c384] : memref<200x768xf32, #tpu.memory_space<vmem>>, vector<8x384xf32>
    tpu.vector_store %arg5[%c0_138, %c384], %78 {strides = array<i32>} : memref<200x768xf32, #tpu.memory_space<vmem>>, vector<8x384xf32>,
    %c0_139 = arith.constant 0 : index
    %c1_140 = arith.constant 1 : index
    %c0_141 = arith.constant 0 : index
    %c0_142 = arith.constant 0 : index
    %c1_143 = arith.constant 1 : index
    %80 = vector.load %arg2[%c0_139, %c1_140, %c0_141, %c0_142, %c1_143] : memref<1x2x1x8x480xf32, #tpu.memory_space<vmem>>, vector<1x1x1x8x384xf32>
    %81 = vector.shape_cast %80 : vector<1x1x1x8x384xf32> to vector<8x384xf32>
    %c8_144 = arith.constant 8 : index
    %c384_145 = arith.constant 384 : index
    %82 = vector.load %arg5[%c8_144, %c384_145] : memref<200x768xf32, #tpu.memory_space<vmem>>, vector<8x384xf32>
    tpu.vector_store %arg5[%c8_144, %c384_145], %81 {strides = array<i32>} : memref<200x768xf32, #tpu.memory_space<vmem>>, vector<8x384xf32>,
    %c0_146 = arith.constant 0 : index
    %c1_147 = arith.constant 1 : index
    %c0_148 = arith.constant 0 : index
    %c0_149 = arith.constant 0 : index
    %c2_150 = arith.constant 2 : index
    %83 = vector.load %arg2[%c0_146, %c1_147, %c0_148, %c0_149, %c2_150] : memref<1x2x1x8x480xf32, #tpu.memory_space<vmem>>, vector<1x1x1x8x384xf32>
    %84 = vector.shape_cast %83 : vector<1x1x1x8x384xf32> to vector<8x384xf32>
    %c16_151 = arith.constant 16 : index
    %c384_152 = arith.constant 384 : index
    %85 = vector.load %arg5[%c16_151, %c384_152] : memref<200x768xf32, #tpu.memory_space<vmem>>, vector<8x384xf32>
    tpu.vector_store %arg5[%c16_151, %c384_152], %84 {strides = array<i32>} : memref<200x768xf32, #tpu.memory_space<vmem>>, vector<8x384xf32>,
    %c0_153 = arith.constant 0 : index
    %c1_154 = arith.constant 1 : index
    %c0_155 = arith.constant 0 : index
    %c0_156 = arith.constant 0 : index
    %c3_157 = arith.constant 3 : index
    %86 = vector.load %arg2[%c0_153, %c1_154, %c0_155, %c0_156, %c3_157] : memref<1x2x1x8x480xf32, #tpu.memory_space<vmem>>, vector<1x1x1x8x384xf32>
    %87 = vector.shape_cast %86 : vector<1x1x1x8x384xf32> to vector<8x384xf32>
    %c24_158 = arith.constant 24 : index
    %c384_159 = arith.constant 384 : index
    %88 = vector.load %arg5[%c24_158, %c384_159] : memref<200x768xf32, #tpu.memory_space<vmem>>, vector<8x384xf32>
    tpu.vector_store %arg5[%c24_158, %c384_159], %87 {strides = array<i32>} : memref<200x768xf32, #tpu.memory_space<vmem>>, vector<8x384xf32>,
    %c0_160 = arith.constant 0 : index
    %c1_161 = arith.constant 1 : index
    %c0_162 = arith.constant 0 : index
    %c0_163 = arith.constant 0 : index
    %c4_164 = arith.constant 4 : index
    %89 = vector.load %arg2[%c0_160, %c1_161, %c0_162, %c0_163, %c4_164] : memref<1x2x1x8x480xf32, #tpu.memory_space<vmem>>, vector<1x1x1x8x384xf32>
    %90 = vector.shape_cast %89 : vector<1x1x1x8x384xf32> to vector<8x384xf32>
    %c32_165 = arith.constant 32 : index
    %c384_166 = arith.constant 384 : index
    %91 = vector.load %arg5[%c32_165, %c384_166] : memref<200x768xf32, #tpu.memory_space<vmem>>, vector<8x384xf32>
    tpu.vector_store %arg5[%c32_165, %c384_166], %90 {strides = array<i32>} : memref<200x768xf32, #tpu.memory_space<vmem>>, vector<8x384xf32>,
    %c0_167 = arith.constant 0 : index
    %c1_168 = arith.constant 1 : index
    %c0_169 = arith.constant 0 : index
    %c0_170 = arith.constant 0 : index
    %c20_171 = arith.constant 20 : index
    %92 = vector.load %arg2[%c0_167, %c1_168, %c0_169, %c0_170, %c20_171] : memref<1x2x1x8x480xf32, #tpu.memory_space<vmem>>, vector<1x1x1x8x384xf32>
    %93 = vector.shape_cast %92 : vector<1x1x1x8x384xf32> to vector<8x384xf32>
    %c40_172 = arith.constant 40 : index
    %c384_173 = arith.constant 384 : index
    %94 = vector.load %arg5[%c40_172, %c384_173] : memref<200x768xf32, #tpu.memory_space<vmem>>, vector<8x384xf32>
    tpu.vector_store %arg5[%c40_172, %c384_173], %93 {strides = array<i32>} : memref<200x768xf32, #tpu.memory_space<vmem>>, vector<8x384xf32>,
    %c0_174 = arith.constant 0 : index
    %c1_175 = arith.constant 1 : index
    %c0_176 = arith.constant 0 : index
    %c0_177 = arith.constant 0 : index
    %c21_178 = arith.constant 21 : index
    %95 = vector.load %arg2[%c0_174, %c1_175, %c0_176, %c0_177, %c21_178] : memref<1x2x1x8x480xf32, #tpu.memory_space<vmem>>, vector<1x1x1x8x384xf32>
    %96 = vector.shape_cast %95 : vector<1x1x1x8x384xf32> to vector<8x384xf32>
    %c48_179 = arith.constant 48 : index
    %c384_180 = arith.constant 384 : index
    %97 = vector.load %arg5[%c48_179, %c384_180] : memref<200x768xf32, #tpu.memory_space<vmem>>, vector<8x384xf32>
    tpu.vector_store %arg5[%c48_179, %c384_180], %96 {strides = array<i32>} : memref<200x768xf32, #tpu.memory_space<vmem>>, vector<8x384xf32>,
    %c0_181 = arith.constant 0 : index
    %c1_182 = arith.constant 1 : index
    %c0_183 = arith.constant 0 : index
    %c0_184 = arith.constant 0 : index
    %c22_185 = arith.constant 22 : index
    %98 = vector.load %arg2[%c0_181, %c1_182, %c0_183, %c0_184, %c22_185] : memref<1x2x1x8x480xf32, #tpu.memory_space<vmem>>, vector<1x1x1x8x384xf32>
    %99 = vector.shape_cast %98 : vector<1x1x1x8x384xf32> to vector<8x384xf32>
    %c56_186 = arith.constant 56 : index
    %c384_187 = arith.constant 384 : index
    %100 = vector.load %arg5[%c56_186, %c384_187] : memref<200x768xf32, #tpu.memory_space<vmem>>, vector<8x384xf32>
    tpu.vector_store %arg5[%c56_186, %c384_187], %99 {strides = array<i32>} : memref<200x768xf32, #tpu.memory_space<vmem>>, vector<8x384xf32>,
    %c0_188 = arith.constant 0 : index
    %c1_189 = arith.constant 1 : index
    %c0_190 = arith.constant 0 : index
    %c0_191 = arith.constant 0 : index
    %c23_192 = arith.constant 23 : index
    %101 = vector.load %arg2[%c0_188, %c1_189, %c0_190, %c0_191, %c23_192] : memref<1x2x1x8x480xf32, #tpu.memory_space<vmem>>, vector<1x1x1x8x384xf32>
    %102 = vector.shape_cast %101 : vector<1x1x1x8x384xf32> to vector<8x384xf32>
    %c64_193 = arith.constant 64 : index
    %c384_194 = arith.constant 384 : index
    %103 = vector.load %arg5[%c64_193, %c384_194] : memref<200x768xf32, #tpu.memory_space<vmem>>, vector<8x384xf32>
    tpu.vector_store %arg5[%c64_193, %c384_194], %102 {strides = array<i32>} : memref<200x768xf32, #tpu.memory_space<vmem>>, vector<8x384xf32>,
    %c0_195 = arith.constant 0 : index
    %c1_196 = arith.constant 1 : index
    %c0_197 = arith.constant 0 : index
    %c0_198 = arith.constant 0 : index
    %c24_199 = arith.constant 24 : index
    %104 = vector.load %arg2[%c0_195, %c1_196, %c0_197, %c0_198, %c24_199] : memref<1x2x1x8x480xf32, #tpu.memory_space<vmem>>, vector<1x1x1x8x384xf32>
    %105 = vector.shape_cast %104 : vector<1x1x1x8x384xf32> to vector<8x384xf32>
    %c72_200 = arith.constant 72 : index
    %c384_201 = arith.constant 384 : index
    %106 = vector.load %arg5[%c72_200, %c384_201] : memref<200x768xf32, #tpu.memory_space<vmem>>, vector<8x384xf32>
    tpu.vector_store %arg5[%c72_200, %c384_201], %105 {strides = array<i32>} : memref<200x768xf32, #tpu.memory_space<vmem>>, vector<8x384xf32>,
    %c0_202 = arith.constant 0 : index
    %c1_203 = arith.constant 1 : index
    %c0_204 = arith.constant 0 : index
    %c0_205 = arith.constant 0 : index
    %c40_206 = arith.constant 40 : index
    %107 = vector.load %arg2[%c0_202, %c1_203, %c0_204, %c0_205, %c40_206] : memref<1x2x1x8x480xf32, #tpu.memory_space<vmem>>, vector<1x1x1x8x384xf32>
    %108 = vector.shape_cast %107 : vector<1x1x1x8x384xf32> to vector<8x384xf32>
    %c80_207 = arith.constant 80 : index
    %c384_208 = arith.constant 384 : index
    %109 = vector.load %arg5[%c80_207, %c384_208] : memref<200x768xf32, #tpu.memory_space<vmem>>, vector<8x384xf32>
    tpu.vector_store %arg5[%c80_207, %c384_208], %108 {strides = array<i32>} : memref<200x768xf32, #tpu.memory_space<vmem>>, vector<8x384xf32>,
    %c0_209 = arith.constant 0 : index
    %c1_210 = arith.constant 1 : index
    %c0_211 = arith.constant 0 : index
    %c0_212 = arith.constant 0 : index
    %c41_213 = arith.constant 41 : index
    %110 = vector.load %arg2[%c0_209, %c1_210, %c0_211, %c0_212, %c41_213] : memref<1x2x1x8x480xf32, #tpu.memory_space<vmem>>, vector<1x1x1x8x384xf32>
    %111 = vector.shape_cast %110 : vector<1x1x1x8x384xf32> to vector<8x384xf32>
    %c88_214 = arith.constant 88 : index
    %c384_215 = arith.constant 384 : index
    %112 = vector.load %arg5[%c88_214, %c384_215] : memref<200x768xf32, #tpu.memory_space<vmem>>, vector<8x384xf32>
    tpu.vector_store %arg5[%c88_214, %c384_215], %111 {strides = array<i32>} : memref<200x768xf32, #tpu.memory_space<vmem>>, vector<8x384xf32>,
    %c0_216 = arith.constant 0 : index
    %c1_217 = arith.constant 1 : index
    %c0_218 = arith.constant 0 : index
    %c0_219 = arith.constant 0 : index
    %c42_220 = arith.constant 42 : index
    %113 = vector.load %arg2[%c0_216, %c1_217, %c0_218, %c0_219, %c42_220] : memref<1x2x1x8x480xf32, #tpu.memory_space<vmem>>, vector<1x1x1x8x384xf32>
    %114 = vector.shape_cast %113 : vector<1x1x1x8x384xf32> to vector<8x384xf32>
    %c96_221 = arith.constant 96 : index
    %c384_222 = arith.constant 384 : index
    %115 = vector.load %arg5[%c96_221, %c384_222] : memref<200x768xf32, #tpu.memory_space<vmem>>, vector<8x384xf32>
    tpu.vector_store %arg5[%c96_221, %c384_222], %114 {strides = array<i32>} : memref<200x768xf32, #tpu.memory_space<vmem>>, vector<8x384xf32>,
    %c0_223 = arith.constant 0 : index
    %c1_224 = arith.constant 1 : index
    %c0_225 = arith.constant 0 : index
    %c0_226 = arith.constant 0 : index
    %c43_227 = arith.constant 43 : index
    %116 = vector.load %arg2[%c0_223, %c1_224, %c0_225, %c0_226, %c43_227] : memref<1x2x1x8x480xf32, #tpu.memory_space<vmem>>, vector<1x1x1x8x384xf32>
    %117 = vector.shape_cast %116 : vector<1x1x1x8x384xf32> to vector<8x384xf32>
    %c104_228 = arith.constant 104 : index
    %c384_229 = arith.constant 384 : index
    %118 = vector.load %arg5[%c104_228, %c384_229] : memref<200x768xf32, #tpu.memory_space<vmem>>, vector<8x384xf32>
    tpu.vector_store %arg5[%c104_228, %c384_229], %117 {strides = array<i32>} : memref<200x768xf32, #tpu.memory_space<vmem>>, vector<8x384xf32>,
    %c0_230 = arith.constant 0 : index
    %c1_231 = arith.constant 1 : index
    %c0_232 = arith.constant 0 : index
    %c0_233 = arith.constant 0 : index
    %c44_234 = arith.constant 44 : index
    %119 = vector.load %arg2[%c0_230, %c1_231, %c0_232, %c0_233, %c44_234] : memref<1x2x1x8x480xf32, #tpu.memory_space<vmem>>, vector<1x1x1x8x384xf32>
    %120 = vector.shape_cast %119 : vector<1x1x1x8x384xf32> to vector<8x384xf32>
    %c112_235 = arith.constant 112 : index
    %c384_236 = arith.constant 384 : index
    %121 = vector.load %arg5[%c112_235, %c384_236] : memref<200x768xf32, #tpu.memory_space<vmem>>, vector<8x384xf32>
    tpu.vector_store %arg5[%c112_235, %c384_236], %120 {strides = array<i32>} : memref<200x768xf32, #tpu.memory_space<vmem>>, vector<8x384xf32>,
    %c0_237 = arith.constant 0 : index
    %c1_238 = arith.constant 1 : index
    %c0_239 = arith.constant 0 : index
    %c0_240 = arith.constant 0 : index
    %c60_241 = arith.constant 60 : index
    %122 = vector.load %arg2[%c0_237, %c1_238, %c0_239, %c0_240, %c60_241] : memref<1x2x1x8x480xf32, #tpu.memory_space<vmem>>, vector<1x1x1x8x384xf32>
    %123 = vector.shape_cast %122 : vector<1x1x1x8x384xf32> to vector<8x384xf32>
    %c120_242 = arith.constant 120 : index
    %c384_243 = arith.constant 384 : index
    %124 = vector.load %arg5[%c120_242, %c384_243] : memref<200x768xf32, #tpu.memory_space<vmem>>, vector<8x384xf32>
    tpu.vector_store %arg5[%c120_242, %c384_243], %123 {strides = array<i32>} : memref<200x768xf32, #tpu.memory_space<vmem>>, vector<8x384xf32>,
    %c0_244 = arith.constant 0 : index
    %c1_245 = arith.constant 1 : index
    %c0_246 = arith.constant 0 : index
    %c0_247 = arith.constant 0 : index
    %c61_248 = arith.constant 61 : index
    %125 = vector.load %arg2[%c0_244, %c1_245, %c0_246, %c0_247, %c61_248] : memref<1x2x1x8x480xf32, #tpu.memory_space<vmem>>, vector<1x1x1x8x384xf32>
    %126 = vector.shape_cast %125 : vector<1x1x1x8x384xf32> to vector<8x384xf32>
    %c128_249 = arith.constant 128 : index
    %c384_250 = arith.constant 384 : index
    %127 = vector.load %arg5[%c128_249, %c384_250] : memref<200x768xf32, #tpu.memory_space<vmem>>, vector<8x384xf32>
    tpu.vector_store %arg5[%c128_249, %c384_250], %126 {strides = array<i32>} : memref<200x768xf32, #tpu.memory_space<vmem>>, vector<8x384xf32>,
    %c0_251 = arith.constant 0 : index
    %c1_252 = arith.constant 1 : index
    %c0_253 = arith.constant 0 : index
    %c0_254 = arith.constant 0 : index
    %c62_255 = arith.constant 62 : index
    %128 = vector.load %arg2[%c0_251, %c1_252, %c0_253, %c0_254, %c62_255] : memref<1x2x1x8x480xf32, #tpu.memory_space<vmem>>, vector<1x1x1x8x384xf32>
    %129 = vector.shape_cast %128 : vector<1x1x1x8x384xf32> to vector<8x384xf32>
    %c136_256 = arith.constant 136 : index
    %c384_257 = arith.constant 384 : index
    %130 = vector.load %arg5[%c136_256, %c384_257] : memref<200x768xf32, #tpu.memory_space<vmem>>, vector<8x384xf32>
    tpu.vector_store %arg5[%c136_256, %c384_257], %129 {strides = array<i32>} : memref<200x768xf32, #tpu.memory_space<vmem>>, vector<8x384xf32>,
    %c0_258 = arith.constant 0 : index
    %c1_259 = arith.constant 1 : index
    %c0_260 = arith.constant 0 : index
    %c0_261 = arith.constant 0 : index
    %c63_262 = arith.constant 63 : index
    %131 = vector.load %arg2[%c0_258, %c1_259, %c0_260, %c0_261, %c63_262] : memref<1x2x1x8x480xf32, #tpu.memory_space<vmem>>, vector<1x1x1x8x384xf32>
    %132 = vector.shape_cast %131 : vector<1x1x1x8x384xf32> to vector<8x384xf32>
    %c144_263 = arith.constant 144 : index
    %c384_264 = arith.constant 384 : index
    %133 = vector.load %arg5[%c144_263, %c384_264] : memref<200x768xf32, #tpu.memory_space<vmem>>, vector<8x384xf32>
    tpu.vector_store %arg5[%c144_263, %c384_264], %132 {strides = array<i32>} : memref<200x768xf32, #tpu.memory_space<vmem>>, vector<8x384xf32>,
    %c0_265 = arith.constant 0 : index
    %c1_266 = arith.constant 1 : index
    %c0_267 = arith.constant 0 : index
    %c0_268 = arith.constant 0 : index
    %c64_269 = arith.constant 64 : index
    %134 = vector.load %arg2[%c0_265, %c1_266, %c0_267, %c0_268, %c64_269] : memref<1x2x1x8x480xf32, #tpu.memory_space<vmem>>, vector<1x1x1x8x384xf32>
    %135 = vector.shape_cast %134 : vector<1x1x1x8x384xf32> to vector<8x384xf32>
    %c152_270 = arith.constant 152 : index
    %c384_271 = arith.constant 384 : index
    %136 = vector.load %arg5[%c152_270, %c384_271] : memref<200x768xf32, #tpu.memory_space<vmem>>, vector<8x384xf32>
    tpu.vector_store %arg5[%c152_270, %c384_271], %135 {strides = array<i32>} : memref<200x768xf32, #tpu.memory_space<vmem>>, vector<8x384xf32>,
    %c0_272 = arith.constant 0 : index
    %c1_273 = arith.constant 1 : index
    %c0_274 = arith.constant 0 : index
    %c0_275 = arith.constant 0 : index
    %c80_276 = arith.constant 80 : index
    %137 = vector.load %arg2[%c0_272, %c1_273, %c0_274, %c0_275, %c80_276] : memref<1x2x1x8x480xf32, #tpu.memory_space<vmem>>, vector<1x1x1x8x384xf32>
    %138 = vector.shape_cast %137 : vector<1x1x1x8x384xf32> to vector<8x384xf32>
    %c160_277 = arith.constant 160 : index
    %c384_278 = arith.constant 384 : index
    %139 = vector.load %arg5[%c160_277, %c384_278] : memref<200x768xf32, #tpu.memory_space<vmem>>, vector<8x384xf32>
    tpu.vector_store %arg5[%c160_277, %c384_278], %138 {strides = array<i32>} : memref<200x768xf32, #tpu.memory_space<vmem>>, vector<8x384xf32>,
    %c0_279 = arith.constant 0 : index
    %c1_280 = arith.constant 1 : index
    %c0_281 = arith.constant 0 : index
    %c0_282 = arith.constant 0 : index
    %c81_283 = arith.constant 81 : index
    %140 = vector.load %arg2[%c0_279, %c1_280, %c0_281, %c0_282, %c81_283] : memref<1x2x1x8x480xf32, #tpu.memory_space<vmem>>, vector<1x1x1x8x384xf32>
    %141 = vector.shape_cast %140 : vector<1x1x1x8x384xf32> to vector<8x384xf32>
    %c168_284 = arith.constant 168 : index
    %c384_285 = arith.constant 384 : index
    %142 = vector.load %arg5[%c168_284, %c384_285] : memref<200x768xf32, #tpu.memory_space<vmem>>, vector<8x384xf32>
    tpu.vector_store %arg5[%c168_284, %c384_285], %141 {strides = array<i32>} : memref<200x768xf32, #tpu.memory_space<vmem>>, vector<8x384xf32>,
    %c0_286 = arith.constant 0 : index
    %c1_287 = arith.constant 1 : index
    %c0_288 = arith.constant 0 : index
    %c0_289 = arith.constant 0 : index
    %c82_290 = arith.constant 82 : index
    %143 = vector.load %arg2[%c0_286, %c1_287, %c0_288, %c0_289, %c82_290] : memref<1x2x1x8x480xf32, #tpu.memory_space<vmem>>, vector<1x1x1x8x384xf32>
    %144 = vector.shape_cast %143 : vector<1x1x1x8x384xf32> to vector<8x384xf32>
    %c176_291 = arith.constant 176 : index
    %c384_292 = arith.constant 384 : index
    %145 = vector.load %arg5[%c176_291, %c384_292] : memref<200x768xf32, #tpu.memory_space<vmem>>, vector<8x384xf32>
    tpu.vector_store %arg5[%c176_291, %c384_292], %144 {strides = array<i32>} : memref<200x768xf32, #tpu.memory_space<vmem>>, vector<8x384xf32>,
    %c0_293 = arith.constant 0 : index
    %c1_294 = arith.constant 1 : index
    %c0_295 = arith.constant 0 : index
    %c0_296 = arith.constant 0 : index
    %c83_297 = arith.constant 83 : index
    %146 = vector.load %arg2[%c0_293, %c1_294, %c0_295, %c0_296, %c83_297] : memref<1x2x1x8x480xf32, #tpu.memory_space<vmem>>, vector<1x1x1x8x384xf32>
    %147 = vector.shape_cast %146 : vector<1x1x1x8x384xf32> to vector<8x384xf32>
    %c184_298 = arith.constant 184 : index
    %c384_299 = arith.constant 384 : index
    %148 = vector.load %arg5[%c184_298, %c384_299] : memref<200x768xf32, #tpu.memory_space<vmem>>, vector<8x384xf32>
    tpu.vector_store %arg5[%c184_298, %c384_299], %147 {strides = array<i32>} : memref<200x768xf32, #tpu.memory_space<vmem>>, vector<8x384xf32>,
    %c0_300 = arith.constant 0 : index
    %c1_301 = arith.constant 1 : index
    %c0_302 = arith.constant 0 : index
    %c0_303 = arith.constant 0 : index
    %c84_304 = arith.constant 84 : index
    %149 = vector.load %arg2[%c0_300, %c1_301, %c0_302, %c0_303, %c84_304] : memref<1x2x1x8x480xf32, #tpu.memory_space<vmem>>, vector<1x1x1x8x384xf32>
    %150 = vector.shape_cast %149 : vector<1x1x1x8x384xf32> to vector<8x384xf32>
    %c192_305 = arith.constant 192 : index
    %c384_306 = arith.constant 384 : index
    %151 = vector.load %arg5[%c192_305, %c384_306] : memref<200x768xf32, #tpu.memory_space<vmem>>, vector<8x384xf32>
    tpu.vector_store %arg5[%c192_305, %c384_306], %150 {strides = array<i32>} : memref<200x768xf32, #tpu.memory_space<vmem>>, vector<8x384xf32>,
    %c0_307 = arith.constant 0 : index
    %c0_308 = arith.constant 0 : index
    %152 = vector.load %arg5[%c0_307, %c0_308] : memref<200x768xf32, #tpu.memory_space<vmem>>, vector<200x768xf32>
    %cst = arith.constant dense<0.000000e+00> : vector<8x768xf32>
    %153 = tpu.matmul %1, %152, %cst {dimension_numbers = #tpu.dot_dimension_numbers<[1], [0], [0], [1], [0, 0, 1, 1], [], []>} : vector<8x200xf32>, vector<200x768xf32>, vector<8x768xf32> -> vector<8x768xf32>
    %154 = vector.extract_strided_slice %153 {offsets = [0, 0], sizes = [8, 384], strides = [1, 1]} : vector<8x768xf32> to vector<8x384xf32>
    %c0_309 = arith.constant 0 : index
    %c0_310 = arith.constant 0 : index
    %c0_311 = arith.constant 0 : index
    %c0_312 = arith.constant 0 : index
    %c0_313 = arith.constant 0 : index
    %155 = vector.load %arg4[%c0_309, %c0_310, %c0_311, %c0_312, %c0_313] : memref<1x2x1x8x384xf32, #tpu.memory_space<vmem>>, vector<1x1x1x8x384xf32>
    %156 = vector.shape_cast %155 : vector<1x1x1x8x384xf32> to vector<8x384xf32>
    %157 = vector.shape_cast %154 : vector<8x384xf32> to vector<1x1x1x8x384xf32>
    tpu.vector_store %arg4[%c0_309, %c0_310, %c0_311, %c0_312, %c0_313], %157 {strides = array<i32>} : memref<1x2x1x8x384xf32, #tpu.memory_space<vmem>>, vector<1x1x1x8x384xf32>,
    %158 = vector.extract_strided_slice %153 {offsets = [0, 384], sizes = [8, 384], strides = [1, 1]} : vector<8x768xf32> to vector<8x384xf32>
    %c0_314 = arith.constant 0 : index
    %c1_315 = arith.constant 1 : index
    %c0_316 = arith.constant 0 : index
    %c0_317 = arith.constant 0 : index
    %c0_318 = arith.constant 0 : index
    %159 = vector.load %arg4[%c0_314, %c1_315, %c0_316, %c0_317, %c0_318] : memref<1x2x1x8x384xf32, #tpu.memory_space<vmem>>, vector<1x1x1x8x384xf32>
    %160 = vector.shape_cast %159 : vector<1x1x1x8x384xf32> to vector<8x384xf32>
    %161 = vector.shape_cast %158 : vector<8x384xf32> to vector<1x1x1x8x384xf32>
    tpu.vector_store %arg4[%c0_314, %c1_315, %c0_316, %c0_317, %c0_318], %161 {strides = array<i32>} : memref<1x2x1x8x384xf32, #tpu.memory_space<vmem>>, vector<1x1x1x8x384xf32>,
    return
  }
  func.func @transform_0(%arg0: i32, %arg1: i32) -> (i32, i32, i32, i32, i32) {
    %c0_i32 = arith.constant 0 : i32
    %c0_i32_0 = arith.constant 0 : i32
    %c0_i32_1 = arith.constant 0 : i32
    %c0_i32_2 = arith.constant 0 : i32
    return %arg1, %c0_i32, %arg0, %c0_i32_0, %c0_i32_1 : i32, i32, i32, i32, i32
  }
  func.func @transform_1(%arg0: i32, %arg1: i32) -> (i32, i32, i32) {
    %c0_i32 = arith.constant 0 : i32
    %c0_i32_0 = arith.constant 0 : i32
    %c0_i32_1 = arith.constant 0 : i32
    return %arg0, %c0_i32, %c0_i32_0 : i32, i32, i32
  }
  func.func @transform_2(%arg0: i32, %arg1: i32) -> (i32, i32, i32, i32, i32) {
    %c0_i32 = arith.constant 0 : i32
    %c0_i32_0 = arith.constant 0 : i32
    %c0_i32_1 = arith.constant 0 : i32
    %c0_i32_2 = arith.constant 0 : i32
    return %arg1, %c0_i32, %arg0, %c0_i32_0, %c0_i32_1 : i32, i32, i32, i32, i32
  }
}

</mosaic_0001>

<bundles_post_ra>
// kernel: tpu_custom_call.1
= control target key start
LH: loop header
LB: loop body
LE: loop exit
PB: predicated region body
PF: predicated region fallthrough
CT: control target
= control target key end

     0   :  { %7 = vsyncpa [#allocation4], 0  ;;  %s3063_s0 = inlined_call_operand.hbm [shape: f32[1,2,1,8,480], index: 0, kind: input, shape index: {}]   ;;  %s3064_s1 = inlined_call_operand.hbm [shape: f32[1,8,200], index: 1, kind: input, shape index: {}]   ;;  %s3065_s2 = inlined_call_operand.hbm [shape: f32[1,2,1,8,384], index: 2, kind: output, shape index: {}]  }
   0x1   :  { %8 = vsyncpa [#allocation7], 0 }
   0x2   :  { %9 = vsyncpa [#allocation5], 0  ;;  %s2354_s9 = smov [#allocation3]   ;;  %s2282_s13 = scalar_lea.hbm %s3063_s0, 1024 }
   0x3   :  { %s15_s10 = sshll.u32 %s2354_s9, 4  ;;  %p2283_p0 = scmp.ne.s32.totalorder %s3063_s0, %s2282_s13  ;;  %s16_s10 = int_to_ptr.vmem [resolvable:$true] %s15_s10 }
   0x4   :  { %p2286_p1 = scmp.lt.u32.totalorder %s2282_s13, %s3063_s0 }
   0x6   :  { %p2288_p2 = pnand %p2286_p1, %p2283_p0 }
   0x8   :  { %2291 = shalt.err (!%p2288_p2)
}
   0x9   :  { %s2292_s18 = scalar_lea.vmem %s16_s10, 1024  ;;  %p2297_p4 = scmp.lt.s32.totalorder %s16_s10, %s16_s10 }
   0xa   :  { %p2293_p3 = scmp.ne.s32.totalorder %s16_s10, %s2292_s18  ;;  %p2298_p5 = scmp.lt.s32.totalorder %s2292_s18, %s2292_s18 }
   0xc   :  { %p2299_p6 = por %p2298_p5, %p2297_p4 }
   0xe   :  { %p2300_p7 = pnand %p2299_p6, %p2293_p3 }
  0x10   :  { %2303 = shalt.err (!%p2300_p7)
}
  0x11   :  { %s2355_s19 = smov 512   ;;  %s2356_s20 = smov 32  }
  0x12   :  { %21 = dma.hbm_to_vmem [thread:$0]  %s3063_s0, 1024, %s16_s10, [#allocation4], %s2355_s19, %s2355_s19, %s2356_s20  }
  0x13   :  { %s2357_s23 = smov [#allocation6]   ;;  %s2304_s27 = scalar_lea.hbm %s3064_s1, 256 }
  0x14   :  { %s28_s24 = sshll.u32 %s2357_s23, 4  ;;  %p2305_p8 = scmp.ne.s32.totalorder %s3064_s1, %s2304_s27  ;;  %s29_s24 = int_to_ptr.vmem [resolvable:$true] %s28_s24 }
  0x15   :  { %p2308_p9 = scmp.lt.u32.totalorder %s2304_s27, %s3064_s1 }
  0x17   :  { %p2310_p10 = pnand %p2308_p9, %p2305_p8 }
  0x19   :  { %2313 = shalt.err (!%p2310_p10)
}
  0x1a   :  { %s2314_s4 = scalar_lea.vmem %s29_s24, 256  ;;  %p2319_p12 = scmp.lt.s32.totalorder %s29_s24, %s29_s24 }
  0x1b   :  { %p2315_p11 = scmp.ne.s32.totalorder %s29_s24, %s2314_s4  ;;  %p2320_p13 = scmp.lt.s32.totalorder %s2314_s4, %s2314_s4 }
  0x1d   :  { %p2321_p0 = por %p2320_p13, %p2319_p12 }
  0x1f   :  { %p2322_p1 = pnand %p2321_p0, %p2315_p11 }
  0x21   :  { %2325 = shalt.err (!%p2322_p1)
}
  0x22   :  { %31 = dma.hbm_to_vmem [thread:$0]  %s3064_s1, 256, %s29_s24, [#allocation7]  }
  0x23   :  { %2348 = dma.done.wait [#allocation4], 1024  }
  0x24   :  { %2349 = vsyncadd [#allocation4], 4294966272 }
  0x25   :  { %2350 = dma.done.wait [#allocation7], 256  }
  0x26   :  { %2351 = vsyncadd [#allocation7], 4294967040  ;;  %v2424_v0 = vld [vmem:[#allocation3] sm:$0xff]  ;;  %v2426_v1 = vld [vmem:[#allocation3 + $0x8] sm:$0xff]  ;;  %s2358_s6 = smov 126   ;;  %s2359_s1 = smov 127  }
  0x27   :  { %v2428_v2 = vld [vmem:[#allocation3 + $0x10] sm:$0xff]  ;;  %v1857_v3 = vpack.i.bf16 %v2426_v1, %v2424_v0  ;;  %v2432_v4 = vld [vmem:[#allocation3 + $0x20] sm:$0xff]  ;;  %v2434_v5 = vld [vmem:[#allocation3 + $0x18] sm:$0xff]  ;;  %s2360_s7 = smov 125   ;;  %s2361_s8 = smov 108   ;;  %vm1427_vm0 = vcmask 588800  }
  0x28   :  { %v1862_v6 = vpack.i.bf16 %v2432_v4, %v2428_v2  ;;  %v1852_v7 = vpack.i.bf16 %v2434_v5, %v2428_v2  ;;  %v1872_v8 = vpack.i.bf16 %v2432_v4, %v2424_v0  ;;  %v1867_v9 = vpack.i.bf16 %v2428_v2, %v2426_v1  ;;  %s2362_s9 = smov 124   ;;  %s2363_s10 = smov 106   ;;  %v2495_v10 = vld [vmem:[#allocation3 + $0x30] sm:$0xff]  ;;  %v2497_v11 = vld [vmem:[#allocation3 + $0x38] sm:$0xff]  ;;  %v2499_v12 = vld [vmem:[#allocation3 + $0x28] sm:$0xff] }
  0x29   :  { %1858 = vrot.lane.b32.xlu1 %v1857_v3, %s2358_s6  ;;  %1848 = vrot.lane.b32.xlu0 %v1857_v3, %s2359_s1  ;;  %s2364_s11 = smov 107   ;;  %s2365_s12 = smov 104   ;;  %v2501_v13 = vld [vmem:[#allocation6 + $0x8] sm:$0xff]  ;;  %v2513_v14 = vpack.i.bf16 %v2497_v11, %v2495_v10  ;;  %v2517_v15 = vpack.i.bf16 %v2499_v12, %v2432_v4  ;;  %v2525_v16 = vpack.i.bf16 %v2495_v10, %v2499_v12  ;;  %vm62_vm1 = vcmask 1039360  }
  0x2a   :  { %s2366_s13 = smov 105   ;;  %s2367_s14 = smov 87   ;;  %1669 = vmatprep.mubr.msk.f32.mxu0 %vm1427_vm0, %v2501_v13  ;;  %1670 = vmatprep.mubr.msk.f32.mxu1 %vm1427_vm0, %v2501_v13  ;;  %v2533_v17 = vpack.i.bf16 %v2434_v5, %v2497_v11  ;;  %vm88_vm2 = vcmask 1031168   ;;  %vm114_vm3 = vcmask 1022976   ;;  %vm140_vm4 = vcmask 1014784  }
  0x2b   :  { %s2368_s15 = smov 88   ;;  %s2369_s16 = smov 85   ;;  %vm166_vm5 = vcmask 883712   ;;  %vm192_vm6 = vcmask 875520   ;;  %vm218_vm7 = vcmask 867328   ;;  %vm244_vm8 = vcmask 859136  }
  0x2c   :  { %s2370_s17 = smov 86   ;;  %s2371_s18 = smov 68   ;;  %vm270_vm9 = vcmask 850944   ;;  %vm296_vm10 = vcmask 719872   ;;  %vm322_vm11 = vcmask 711680   ;;  %vm3067_vm12 = vcmask 703488  }
  0x2d   :  { %1863 = vrot.lane.b32.xlu1 %v1862_v6, %s2358_s6  ;;  %1853 = vrot.lane.b32.xlu0 %v1852_v7, %s2359_s1  ;;  %s2372_s19 = smov 84   ;;  %s2373_s20 = smov 66   ;;  %vm3066_vm13 = vcmask 695296   ;;  %vm3073_vm14 = vcmask 687104   ;;  %vm3072_vm15 = vcmask 556032  }
  0x2e   :  { %s2374_s21 = smov 67   ;;  %s2375_s22 = smov 64  }
  0x2f   :  { %s2376_s23 = smov 65   ;;  %s2377_s24 = smov 47  }
  0x30   :  { %s2378_s25 = smov 48   ;;  %s2379_s26 = smov 45  }
  0x31   :  { %1873 = vrot.lane.b32.xlu1 %v1872_v8, %s2360_s7  ;;  %1868 = vrot.lane.b32.xlu0 %v1867_v9, %s2360_s7  ;;  %s2380_s27 = smov 46   ;;  %s2381_s28 = smov 44  }
  0x32   :  { %s2382_s29 = smov [#allocation8]  }
  0x33   :  { %s1656_s30 = sshll.u32 %s2382_s29, 4  ;;  %s1657_s30 = int_to_ptr.vmem [resolvable:$true] %s1656_s30 }
  0x34   :  { %s2326_s3 = scalar_lea.vmem %s1657_s30, 768  ;;  %p2331_p3 = scmp.lt.s32.totalorder %s1657_s30, %s1657_s30 }
  0x35   :  { %1883 = vrot.lane.b32.xlu1 %v1867_v9, %s2361_s8  ;;  %1878 = vrot.lane.b32.xlu0 %v1867_v9, %s2362_s9  ;;  %p2327_p2 = scmp.ne.s32.totalorder %s1657_s30, %s2326_s3  ;;  %p2332_p4 = scmp.lt.s32.totalorder %s2326_s3, %s2326_s3 }
  0x37   :  { %p2333_p5 = por %p2332_p4, %p2331_p3 }
  0x39   :  { %1893 = vrot.lane.b32.xlu1 %v1872_v8, %s2361_s8  ;;  %1888 = vrot.lane.b32.xlu0 %v1872_v8, %s2362_s9  ;;  %p2334_p6 = pnand %p2333_p5, %p2327_p2 }
  0x3d   :  { %1903 = vrot.lane.b32.xlu1 %v1867_v9, %s2363_s10  ;;  %1898 = vrot.lane.b32.xlu0 %v1867_v9, %s2364_s11 }
  0x41   :  { %1913 = vrot.lane.b32.xlu1 %v1872_v8, %s2363_s10  ;;  %1908 = vrot.lane.b32.xlu0 %v1872_v8, %s2364_s11 }
  0x45   :  { %1923 = vrot.lane.b32.xlu1 %v1867_v9, %s2365_s12  ;;  %1918 = vrot.lane.b32.xlu0 %v1867_v9, %s2366_s13 }
  0x49   :  { %1933 = vrot.lane.b32.xlu1 %v1872_v8, %s2365_s12  ;;  %1928 = vrot.lane.b32.xlu0 %v1872_v8, %s2366_s13 }
  0x4d   :  { %1943 = vrot.lane.b32.xlu1 %v1867_v9, %s2367_s14  ;;  %1938 = vrot.lane.b32.xlu0 %v1867_v9, %s2368_s15 }
  0x51   :  { %1953 = vrot.lane.b32.xlu1 %v1872_v8, %s2367_s14  ;;  %1948 = vrot.lane.b32.xlu0 %v1872_v8, %s2368_s15 }
  0x55   :  { %1963 = vrot.lane.b32.xlu1 %v1867_v9, %s2369_s16  ;;  %1958 = vrot.lane.b32.xlu0 %v1867_v9, %s2370_s17 }
  0x59   :  { %1973 = vrot.lane.b32.xlu1 %v1872_v8, %s2369_s16  ;;  %1968 = vrot.lane.b32.xlu0 %v1872_v8, %s2370_s17 }
  0x5d   :  { %1983 = vrot.lane.b32.xlu1 %v1867_v9, %s2371_s18  ;;  %1978 = vrot.lane.b32.xlu0 %v1867_v9, %s2372_s19 }
  0x61   :  { %1993 = vrot.lane.b32.xlu1 %v1872_v8, %s2371_s18  ;;  %1988 = vrot.lane.b32.xlu0 %v1872_v8, %s2372_s19 }
  0x65   :  { %2003 = vrot.lane.b32.xlu1 %v1867_v9, %s2373_s20  ;;  %1998 = vrot.lane.b32.xlu0 %v1867_v9, %s2374_s21 }
  0x69   :  { %2013 = vrot.lane.b32.xlu1 %v1872_v8, %s2373_s20  ;;  %2008 = vrot.lane.b32.xlu0 %v1872_v8, %s2374_s21 }
  0x6d   :  { %2023 = vrot.lane.b32.xlu1 %v1867_v9, %s2375_s22  ;;  %2018 = vrot.lane.b32.xlu0 %v1867_v9, %s2376_s23 }
  0x71   :  { %522 = vrot.lane.b32.xlu1 %v2424_v0, %s2375_s22  ;;  %2028 = vrot.lane.b32.xlu0 %v1872_v8, %s2376_s23 }
  0x75   :  { %2038 = vrot.lane.b32.xlu1 %v1867_v9, %s2377_s24  ;;  %2033 = vrot.lane.b32.xlu0 %v1867_v9, %s2378_s25 }
  0x79   :  { %574 = vrot.lane.b32.xlu1 %v2424_v0, %s2377_s24  ;;  %548 = vrot.lane.b32.xlu0 %v2424_v0, %s2378_s25 }
  0x7d   :  { %2048 = vrot.lane.b32.xlu1 %v1867_v9, %s2379_s26  ;;  %2043 = vrot.lane.b32.xlu0 %v1867_v9, %s2380_s27 }
  0x81   :  { %626 = vrot.lane.b32.xlu1 %v2424_v0, %s2379_s26  ;;  %600 = vrot.lane.b32.xlu0 %v2424_v0, %s2380_s27 }
  0x85   :  { %656 = vrot.lane.b32.xlu1 %v2428_v2, %s2381_s28  ;;  %654 = vrot.lane.b32.xlu0 %v2426_v1, %s2381_s28 }
  0x89   :  { %2058 = vrot.lane.b32.xlu1 %v2513_v14, %s2359_s1  ;;  %2053 = vrot.lane.b32.xlu0 %v2517_v15, %s2359_s1 }
  0x8d   :  { %2063 = vrot.lane.b32.xlu1 %v2525_v16, %s2358_s6  ;;  %652 = vrot.lane.b32.xlu0 %v2424_v0, %s2381_s28 }
  0x91   :  { %2073 = vrot.lane.b32.xlu1 %v2525_v16, %s2360_s7  ;;  %2068 = vrot.lane.b32.xlu0 %v2533_v17, %s2358_s6 }
  0x95   :  { %2083 = vrot.lane.b32.xlu1 %v2525_v16, %s2362_s9  ;;  %2078 = vrot.lane.b32.xlu0 %v2533_v17, %s2360_s7 }
  0x99   :  { %2093 = vrot.lane.b32.xlu1 %v2525_v16, %s2361_s8  ;;  %2088 = vrot.lane.b32.xlu0 %v2533_v17, %s2362_s9 }
  0x9b   :  { %v1859_v18 = vpop.permute.xlu1 %1858  ;;  %v1849_v19 = vpop.permute.xlu0 %1848 }
  0x9c   :  { %v1851_v20 = vunpack.i.h.bf16 %v1849_v19  ;;  %v1850_v21 = vunpack.i.l.bf16 %v1849_v19  ;;  %v1861_v25 = vunpack.i.h.bf16 %v1859_v18  ;;  %v1860_v26 = vunpack.i.l.bf16 %v1859_v18 }
  0x9d   :  { %2103 = vrot.lane.b32.xlu1 %v2525_v16, %s2364_s11  ;;  %2098 = vrot.lane.b32.xlu0 %v2533_v17, %s2361_s8 }
  0x9e   :  { %v63_v29 = vsel %vm62_vm1, %v1850_v21, %v1851_v20  ;;  %v89_v39 = vsel %vm88_vm2, %v1860_v26, %v1861_v25 }
  0x9f   :  { %v2551_v22 = vpop.permute.xlu1 %1863  ;;  %v2553_v23 = vpop.permute.xlu0 %1853  ;;  %v1674_v36 = vpack.c.bf16 %v63_v29, %v2424_v0 }
  0xa0   :  { %v1855_v24 = vunpack.i.l.bf16 %v2553_v23  ;;  %v1865_v27 = vunpack.i.l.bf16 %v2551_v22 }
  0xa1   :  { %2113 = vrot.lane.b32.xlu1 %v2525_v16, %s2363_s10  ;;  %2108 = vrot.lane.b32.xlu0 %v2533_v17, %s2364_s11 }
  0xa2   :  { %v64_v28 = vsel %vm62_vm1, %v1851_v20, %v1855_v24  ;;  %v90_v37 = vsel %vm88_vm2, %v1861_v25, %v1865_v27 }
  0xa3   :  { %v2565_v30 = vpop.permute.xlu1 %1873  ;;  %v2567_v31 = vpop.permute.xlu0 %1868  ;;  %v1672_v32 = vpack.c.bf16 %v64_v28, %v2426_v1 }
  0xa4   :  { %v1875_v33 = vunpack.i.l.bf16 %v2565_v30  ;;  %v3095_v34 = vunpack.i.h.bf16 %v2567_v31  ;;  %v1870_v35 = vunpack.i.l.bf16 %v2567_v31 }
  0xa5   :  { %2123 = vrot.lane.b32.xlu1 %v2525_v16, %s2366_s13  ;;  %2118 = vrot.lane.b32.xlu0 %v2533_v17, %s2363_s10 }
  0xa6   :  { %1673 = vmatprep.subr.bf16.mxu0 %v1672_v32  ;;  %v116_v38 = vsel %vm114_vm3, %v1870_v35, %v3095_v34  ;;  %v115_v40 = vsel %vm114_vm3, %v1875_v33, %v1870_v35  ;;  %v2889_v34 = vld [vmem:[#allocation6] sm:$0xff] }
  0xa7   :  { %1675 = vmatpush1.bf16.msra.mxu0 %v1674_v36  ;;  %v2586_v41 = vpop.permute.xlu1 %1883  ;;  %v2588_v42 = vpop.permute.xlu0 %1878  ;;  %v1676_v43 = vpack.c.bf16 %v116_v38, %v90_v37  ;;  %v1678_v44 = vpack.c.bf16 %v115_v40, %v89_v39 }
  0xa8   :  { %v3093_v45 = vunpack.i.h.bf16 %v2586_v41  ;;  %v1885_v46 = vunpack.i.l.bf16 %v2586_v41  ;;  %v3094_v47 = vunpack.i.h.bf16 %v2588_v42  ;;  %v1880_v48 = vunpack.i.l.bf16 %v2588_v42 }
  0xa9   :  { %2133 = vrot.lane.b32.xlu1 %v2525_v16, %s2365_s12  ;;  %2128 = vrot.lane.b32.xlu0 %v2533_v17, %s2366_s13 }
  0xaa   :  { %1677 = vmatprep.subr.bf16.mxu0 %v1676_v43  ;;  %v142_v49 = vsel %vm140_vm4, %v1880_v48, %v3094_v47  ;;  %v168_v50 = vsel %vm166_vm5, %v1885_v46, %v3093_v45 }
  0xab   :  { %1679 = vmatpush1.bf16.msra.mxu0 %v1678_v44  ;;  %v2604_v51 = vpop.permute.xlu1 %1893  ;;  %v2606_v52 = vpop.permute.xlu0 %1888  ;;  %v1680_v53 = vpack.c.bf16 %v168_v50, %v142_v49 }
  0xac   :  { %v1895_v54 = vunpack.i.l.bf16 %v2604_v51  ;;  %v1890_v55 = vunpack.i.l.bf16 %v2606_v52 }
  0xad   :  { %2143 = vrot.lane.b32.xlu1 %v2525_v16, %s2368_s15  ;;  %2138 = vrot.lane.b32.xlu0 %v2533_v17, %s2365_s12 }
  0xae   :  { %1681 = vmatprep.subr.bf16.mxu0 %v1680_v53  ;;  %v141_v56 = vsel %vm140_vm4, %v1890_v55, %v1880_v48  ;;  %v167_v57 = vsel %vm166_vm5, %v1895_v54, %v1885_v46 }
  0xaf   :  { %v2616_v58 = vpop.permute.xlu1 %1903  ;;  %v2618_v59 = vpop.permute.xlu0 %1898  ;;  %v1682_v60 = vpack.c.bf16 %v167_v57, %v141_v56 }
  0xb0   :  { %v3084_v61 = vunpack.i.h.bf16 %v2616_v58  ;;  %v1905_v62 = vunpack.i.l.bf16 %v2616_v58  ;;  %v3092_v63 = vunpack.i.h.bf16 %v2618_v59  ;;  %v1900_v0 = vunpack.i.l.bf16 %v2618_v59 }
  0xb1   :  { %2153 = vrot.lane.b32.xlu1 %v2525_v16, %s2367_s14  ;;  %2148 = vrot.lane.b32.xlu0 %v2533_v17, %s2368_s15 }
  0xb2   :  { %1683 = vmatpush1.bf16.msra.mxu0 %v1682_v60  ;;  %v194_v1 = vsel %vm192_vm6, %v1900_v0, %v3092_v63  ;;  %v220_v2 = vsel %vm218_vm7, %v1905_v62, %v3084_v61 }
  0xb3   :  { %v2634_v3 = vpop.permute.xlu1 %1913  ;;  %v2636_v4 = vpop.permute.xlu0 %1908  ;;  %v1684_v6 = vpack.c.bf16 %v220_v2, %v194_v1 }
  0xb4   :  { %v1915_v7 = vunpack.i.l.bf16 %v2634_v3  ;;  %v1910_v8 = vunpack.i.l.bf16 %v2636_v4 }
  0xb5   :  { %2163 = vrot.lane.b32.xlu1 %v2525_v16, %s2370_s17  ;;  %2158 = vrot.lane.b32.xlu0 %v2533_v17, %s2367_s14 }
  0xb6   :  { %1685 = vmatprep.subr.bf16.mxu0 %v1684_v6  ;;  %v193_v9 = vsel %vm192_vm6, %v1910_v8, %v1900_v0  ;;  %v219_v18 = vsel %vm218_vm7, %v1915_v7, %v1905_v62 }
  0xb7   :  { %v2646_v19 = vpop.permute.xlu1 %1923  ;;  %v2648_v20 = vpop.permute.xlu0 %1918  ;;  %v1686_v21 = vpack.c.bf16 %v219_v18, %v193_v9 }
  0xb8   :  { %v3082_v25 = vunpack.i.h.bf16 %v2646_v19  ;;  %v1925_v26 = vunpack.i.l.bf16 %v2646_v19  ;;  %v3083_v28 = vunpack.i.h.bf16 %v2648_v20  ;;  %v1920_v29 = vunpack.i.l.bf16 %v2648_v20 }
  0xb9   :  { %2173 = vrot.lane.b32.xlu1 %v2525_v16, %s2369_s16  ;;  %2168 = vrot.lane.b32.xlu0 %v2533_v17, %s2370_s17 }
  0xba   :  { %1687 = vmatpush1.bf16.msra.mxu0 %v1686_v21  ;;  %v246_v32 = vsel %vm244_vm8, %v1920_v29, %v3083_v28  ;;  %v272_v33 = vsel %vm270_vm9, %v1925_v26, %v3082_v25 }
  0xbb   :  { %v2664_v35 = vpop.permute.xlu1 %1933  ;;  %v2666_v36 = vpop.permute.xlu0 %1928  ;;  %v1688_v37 = vpack.c.bf16 %v272_v33, %v246_v32 }
  0xbc   :  { %v1935_v38 = vunpack.i.l.bf16 %v2664_v35  ;;  %v1930_v39 = vunpack.i.l.bf16 %v2666_v36 }
  0xbd   :  { %2183 = vrot.lane.b32.xlu1 %v2525_v16, %s2372_s19  ;;  %2178 = vrot.lane.b32.xlu0 %v2533_v17, %s2369_s16 }
  0xbe   :  { %1689 = vmatprep.subr.bf16.mxu0 %v1688_v37  ;;  %v245_v40 = vsel %vm244_vm8, %v1930_v39, %v1920_v29  ;;  %v271_v43 = vsel %vm270_vm9, %v1935_v38, %v1925_v26 }
  0xbf   :  { %v2676_v44 = vpop.permute.xlu1 %1943  ;;  %v2678_v46 = vpop.permute.xlu0 %1938  ;;  %v1690_v48 = vpack.c.bf16 %v271_v43, %v245_v40 }
  0xc0   :  { %v3076_v49 = vunpack.i.h.bf16 %v2676_v44  ;;  %v1945_v50 = vunpack.i.l.bf16 %v2676_v44  ;;  %v3078_v53 = vunpack.i.h.bf16 %v2678_v46  ;;  %v1940_v54 = vunpack.i.l.bf16 %v2678_v46 }
  0xc1   :  { %2193 = vrot.lane.b32.xlu1 %v2525_v16, %s2371_s18  ;;  %2188 = vrot.lane.b32.xlu0 %v2533_v17, %s2372_s19 }
  0xc2   :  { %1691 = vmatpush1.bf16.msra.mxu0 %v1690_v48  ;;  %v298_v55 = vsel %vm296_vm10, %v1940_v54, %v3078_v53  ;;  %v324_v56 = vsel %vm322_vm11, %v1945_v50, %v3076_v49 }
  0xc3   :  { %v2694_v57 = vpop.permute.xlu1 %1953  ;;  %v2696_v60 = vpop.permute.xlu0 %1948  ;;  %v1692_v62 = vpack.c.bf16 %v324_v56, %v298_v55 }
  0xc4   :  { %v1955_v0 = vunpack.i.l.bf16 %v2694_v57  ;;  %v1950_v1 = vunpack.i.l.bf16 %v2696_v60 }
  0xc5   :  { %2203 = vrot.lane.b32.xlu1 %v2525_v16, %s2374_s21  ;;  %2198 = vrot.lane.b32.xlu0 %v2533_v17, %s2371_s18 }
  0xc6   :  { %1693 = vmatprep.subr.bf16.mxu0 %v1692_v62  ;;  %v297_v2 = vsel %vm296_vm10, %v1950_v1, %v1940_v54  ;;  %v323_v6 = vsel %vm322_vm11, %v1955_v0, %v1945_v50 }
  0xc7   :  { %v2706_v7 = vpop.permute.xlu1 %1963  ;;  %v2708_v8 = vpop.permute.xlu0 %1958  ;;  %v1694_v9 = vpack.c.bf16 %v323_v6, %v297_v2 }
  0xc8   :  { %v3074_v18 = vunpack.i.h.bf16 %v2706_v7  ;;  %v1965_v21 = vunpack.i.l.bf16 %v2706_v7  ;;  %v3075_v26 = vunpack.i.h.bf16 %v2708_v8  ;;  %v1960_v29 = vunpack.i.l.bf16 %v2708_v8 }
  0xc9   :  { %2213 = vrot.lane.b32.xlu1 %v2525_v16, %s2373_s20  ;;  %2208 = vrot.lane.b32.xlu0 %v2533_v17, %s2374_s21 }
  0xca   :  { %1695 = vmatpush1.bf16.msra.mxu0 %v1694_v9  ;;  %v350_v32 = vsel %vm3067_vm12, %v1960_v29, %v3075_v26  ;;  %v376_v33 = vsel %vm3066_vm13, %v1965_v21, %v3074_v18  ;;  %v2754_v9 = vld [vmem:[#allocation3 + $0x20] sm:$0xff] }
  0xcb   :  { %v2724_v37 = vpop.permute.xlu1 %1973  ;;  %v2726_v38 = vpop.permute.xlu0 %1968  ;;  %v1696_v39 = vpack.c.bf16 %v376_v33, %v350_v32  ;;  %v2242_v33 = vpack.i.bf16 %v2499_v12, %v2754_v9 }
  0xcc   :  { %v1975_v40 = vunpack.i.l.bf16 %v2724_v37  ;;  %v1970_v43 = vunpack.i.l.bf16 %v2726_v38 }
  0xcd   :  { %2223 = vrot.lane.b32.xlu1 %v2525_v16, %s2376_s23  ;;  %2218 = vrot.lane.b32.xlu0 %v2533_v17, %s2373_s20 }
  0xce   :  { %1697 = vmatprep.subr.bf16.mxu0 %v1696_v39  ;;  %v349_v48 = vsel %vm3067_vm12, %v1970_v43, %v1960_v29  ;;  %v375_v50 = vsel %vm3066_vm13, %v1975_v40, %v1965_v21  ;;  %vm3081_vm13 = vcmask 547840   ;;  %vm3080_vm12 = vcmask 539648  }
  0xcf   :  { %v2736_v54 = vpop.permute.xlu1 %1983  ;;  %v2738_v55 = vpop.permute.xlu0 %1978  ;;  %v1698_v56 = vpack.c.bf16 %v375_v50, %v349_v48 }
  0xd0   :  { %v3070_v62 = vunpack.i.h.bf16 %v2736_v54  ;;  %v1985_v0 = vunpack.i.l.bf16 %v2736_v54  ;;  %v3071_v16 = vunpack.i.h.bf16 %v2738_v55  ;;  %v1980_v1 = vunpack.i.l.bf16 %v2738_v55 }
  0xd1   :  { %2233 = vrot.lane.b32.xlu1 %v2517_v15, %s2375_s22  ;;  %2228 = vrot.lane.b32.xlu0 %v2533_v17, %s2376_s23 }
  0xd2   :  { %1699 = vmatpush1.bf16.msra.mxu0 %v1698_v56  ;;  %v402_v2 = vsel %vm3073_vm14, %v1980_v1, %v3071_v16  ;;  %v428_v6 = vsel %vm3072_vm15, %v1985_v0, %v3070_v62 }
  0xd3   :  { %v2756_v21 = vpop.permute.xlu1 %1993  ;;  %v2758_v29 = vpop.permute.xlu0 %1988  ;;  %v1700_v32 = vpack.c.bf16 %v428_v6, %v402_v2 }
  0xd4   :  { %v1995_v15 = vunpack.i.l.bf16 %v2756_v21  ;;  %v1990_v17 = vunpack.i.l.bf16 %v2758_v29 }
  0xd5   :  { %528 = vrot.lane.b32.xlu1 %v2434_v5, %s2375_s22  ;;  %2238 = vrot.lane.b32.xlu0 %v2513_v14, %s2375_s22 }
  0xd6   :  { %1701 = vmatprep.subr.bf16.mxu0 %v1700_v32  ;;  %v401_v39 = vsel %vm3073_vm14, %v1990_v17, %v1980_v1  ;;  %v427_v40 = vsel %vm3072_vm15, %v1995_v15, %v1985_v0  ;;  %vm3085_vm15 = vcmask 523264   ;;  %vm3086_vm14 = vcmask 531456  }
  0xd7   :  { %v2770_v43 = vpop.permute.xlu1 %2003  ;;  %v2772_v48 = vpop.permute.xlu0 %1998  ;;  %v1702_v50 = vpack.c.bf16 %v427_v40, %v401_v39 }
  0xd8   :  { %v3069_v5 = vunpack.i.h.bf16 %v2770_v43  ;;  %v2005_v56 = vunpack.i.l.bf16 %v2770_v43  ;;  %v3068_v2 = vunpack.i.h.bf16 %v2772_v48  ;;  %v2000_v6 = vunpack.i.l.bf16 %v2772_v48 }
  0xd9   :  { %2248 = vrot.lane.b32.xlu1 %v2513_v14, %s2378_s25  ;;  %2243 = vrot.lane.b32.xlu0 %v2242_v33, %s2378_s25 }
  0xda   :  { %1703 = vmatpush1.bf16.msra.mxu0 %v1702_v50  ;;  %v454_v0 = vsel %vm3081_vm13, %v2000_v6, %v3068_v2  ;;  %v480_v1 = vsel %vm3080_vm12, %v2005_v56, %v3069_v5  ;;  %v2796_v50 = vld [vmem:[#allocation3 + $0x18] sm:$0xff] }
  0xdb   :  { %v2787_v32 = vpop.permute.xlu1 %2013  ;;  %v2789_v15 = vpop.permute.xlu0 %2008  ;;  %v1704_v17 = vpack.c.bf16 %v480_v1, %v454_v0 }
  0xdc   :  { %v2015_v39 = vunpack.i.l.bf16 %v2787_v32  ;;  %v2010_v40 = vunpack.i.l.bf16 %v2789_v15 }
  0xdd   :  { %2258 = vrot.lane.b32.xlu1 %v2513_v14, %s2377_s24  ;;  %2253 = vrot.lane.b32.xlu0 %v2242_v33, %s2377_s24 }
  0xde   :  { %1705 = vmatprep.subr.bf16.mxu0 %v1704_v17  ;;  %v453_v2 = vsel %vm3081_vm13, %v2010_v40, %v2000_v6  ;;  %v479_v5 = vsel %vm3080_vm12, %v2015_v39, %v2005_v56  ;;  %vm3088_vm12 = vcmask 384000   ;;  %vm556_vm13 = vcmask 392192  }
  0xdf   :  { %v2800_v62 = vpop.permute.xlu1 %2023  ;;  %v2802_v16 = vpop.permute.xlu0 %2018  ;;  %v1706_v0 = vpack.c.bf16 %v479_v5, %v453_v2 }
  0xe0   :  { %v3079_v1 = vunpack.i.h.bf16 %v2800_v62  ;;  %v2025_v18 = vunpack.i.l.bf16 %v2800_v62  ;;  %v3077_v26 = vunpack.i.h.bf16 %v2802_v16  ;;  %v2020_v17 = vunpack.i.l.bf16 %v2802_v16 }
  0xe1   :  { %580 = vrot.lane.b32.xlu1 %v2796_v50, %s2377_s24  ;;  %554 = vrot.lane.b32.xlu0 %v2796_v50, %s2378_s25 }
  0xe2   :  { %1707 = vmatpush1.bf16.msra.mxu0 %v1706_v0  ;;  %v506_v5 = vsel %vm3086_vm14, %v2020_v17, %v3077_v26  ;;  %v532_v56 = vsel %vm3085_vm15, %v2025_v18, %v3079_v1 }
  0xe3   :  { %v523_v2 = vpop.permute.xlu1 %522  ;;  %v2818_v6 = vpop.permute.xlu0 %2028  ;;  %v1708_v39 = vpack.c.bf16 %v532_v56, %v506_v5 }
  0xe4   :  { %v531_v40 = vsel %vm3085_vm15, %v523_v2, %v2025_v18  ;;  %v2030_v49 = vunpack.i.l.bf16 %v2818_v6  ;;  %vm634_vm15 = vcmask 367616  }
  0xe5   :  { %2268 = vrot.lane.b32.xlu1 %v2513_v14, %s2380_s27  ;;  %2263 = vrot.lane.b32.xlu0 %v2242_v33, %s2380_s27 }
  0xe6   :  { %1709 = vmatprep.subr.bf16.mxu0 %v1708_v39  ;;  %v505_v0 = vsel %vm3086_vm14, %v2030_v49, %v2020_v17  ;;  %vm608_vm14 = vcmask 375808  }
  0xe7   :  { %v2826_v26 = vpop.permute.xlu1 %2038  ;;  %v2828_v53 = vpop.permute.xlu0 %2033  ;;  %v1710_v1 = vpack.c.bf16 %v531_v40, %v505_v0 }
  0xe8   :  { %v3090_v5 = vunpack.i.h.bf16 %v2826_v26  ;;  %v2040_v18 = vunpack.i.l.bf16 %v2826_v26  ;;  %v3087_v56 = vunpack.i.h.bf16 %v2828_v53  ;;  %v2035_v2 = vunpack.i.l.bf16 %v2828_v53 }
  0xe9   :  { %2278 = vrot.lane.b32.xlu1 %v2513_v14, %s2379_s26  ;;  %2273 = vrot.lane.b32.xlu0 %v2242_v33, %s2379_s26 }
  0xea   :  { %1711 = vmatpush1.bf16.msra.mxu0 %v1710_v1  ;;  %v558_v49 = vsel %vm556_vm13, %v2035_v2, %v3087_v56  ;;  %v584_v17 = vsel %vm3088_vm12, %v2040_v18, %v3090_v5 }
  0xeb   :  { %v575_v39 = vpop.permute.xlu1 %574  ;;  %v549_v40 = vpop.permute.xlu0 %548  ;;  %v1712_v0 = vpack.c.bf16 %v584_v17, %v558_v49 }
  0xec   :  { %v583_v25 = vsel %vm3088_vm12, %v575_v39, %v2040_v18  ;;  %v557_v28 = vsel %vm556_vm13, %v549_v40, %v2035_v2  ;;  %vm660_vm12 = vcmask 359424  }
  0xed   :  { %v1714_v61 = vpack.c.bf16 %v583_v25, %v557_v28  ;;  %632 = vrot.lane.b32.xlu1 %v2796_v50, %s2379_s26  ;;  %606 = vrot.lane.b32.xlu0 %v2796_v50, %s2380_s27 }
  0xee   :  { %1713 = vmatprep.subr.bf16.mxu0 %v1712_v0 }
  0xef   :  { %v2849_v14 = vpop.permute.xlu1 %2048  ;;  %v2851_v33 = vpop.permute.xlu0 %2043  ;;  %1715 = vmatpush1.bf16.msra.mxu0 %v1714_v61 }
  0xf0   :  { %v3091_v1 = vunpack.i.h.bf16 %v2849_v14  ;;  %v2050_v18 = vunpack.i.l.bf16 %v2849_v14  ;;  %v3089_v25 = vunpack.i.h.bf16 %v2851_v33  ;;  %v2045_v28 = vunpack.i.l.bf16 %v2851_v33 }
  0xf1   :  { %1262 = vrot.lane.b32.xlu1 %v2499_v12, %s2381_s28  ;;  %1260 = vrot.lane.b32.xlu0 %v2754_v9, %s2381_s28 }
  0xf2   :  { %v610_v61 = vsel %vm608_vm14, %v2045_v28, %v3089_v25  ;;  %v636_v2 = vsel %vm634_vm15, %v2050_v18, %v3091_v1 }
  0xf3   :  { %v627_v49 = vpop.permute.xlu1 %626  ;;  %v601_v17 = vpop.permute.xlu0 %600  ;;  %v1716_v39 = vpack.c.bf16 %v636_v2, %v610_v61 }
  0xf4   :  { %v635_v40 = vsel %vm634_vm15, %v627_v49, %v2050_v18  ;;  %v609_v0 = vsel %vm608_vm14, %v601_v17, %v2045_v28  ;;  %v1856_v18 = vunpack.i.h.bf16 %v2553_v23 }
  0xf5   :  { %v1718_v56 = vpack.c.bf16 %v635_v40, %v609_v0  ;;  %1266 = vrot.lane.b32.xlu1 %v2497_v11, %s2381_s28  ;;  %1264 = vrot.lane.b32.xlu0 %v2495_v10, %s2381_s28 }
  0xf6   :  { %1717 = vmatprep.subr.bf16.mxu0 %v1716_v39  ;;  %v42_v39 = vld [vmem:[#allocation3 + $0x10] sm:$0xff] }
  0xf7   :  { %v2873_v25 = vpop.permute.xlu1 %656  ;;  %v655_v5 = vpop.permute.xlu0 %654  ;;  %1719 = vmatpush1.bf16.msra.mxu0 %v1718_v56  ;;  %v65_v56 = vsel %vm62_vm1, %v1855_v24, %v1856_v18 }
  0xf8   :  { %v662_v61 = vsel %vm660_vm12, %v655_v5, %v2873_v25 }
  0xf9   :  { %658 = vrot.lane.b32.xlu0 %v2796_v50, %s2381_s28  ;;  %1479 = vmatprep.subr.mxu0 %v662_v61 }
  0xfb   :  { %v2059_v28 = vpop.permute.xlu1 %2058  ;;  %v2054_v11 = vpop.permute.xlu0 %2053 }
  0xfc   :  { %v2061_v2 = vunpack.i.h.bf16 %v2059_v28  ;;  %v2060_v49 = vunpack.i.l.bf16 %v2059_v28  ;;  %v2056_v17 = vunpack.i.h.bf16 %v2054_v11  ;;  %v2055_v40 = vunpack.i.l.bf16 %v2054_v11 }
  0xfd   :  { %v1722_v11 = vpack.c.bf16 %v65_v56, %v42_v39 }
  0xfe   :  { %v693_v0 = vsel %vm62_vm1, %v2055_v40, %v2056_v17  ;;  %v695_v1 = vsel %vm62_vm1, %v2060_v49, %v2061_v2  ;;  %v694_v63 = vsel %vm62_vm1, %v2056_v17, %v2060_v49  ;;  %vm3106_vm1 = vcmask 695296  }
  0xff   :  { %v2064_v45 = vpop.permute.xlu1 %2063  ;;  %v653_v50 = vpop.permute.xlu0 %652  ;;  %v1720_v61 = vpack.c.bf16 %v693_v0, %v2754_v9  ;;  %v1768_v47 = vpack.c.bf16 %v695_v1, %v2495_v10  ;;  %v1770_v23 = vpack.c.bf16 %v694_v63, %v2499_v12  ;;  %v1866_v9 = vunpack.i.h.bf16 %v2551_v22 }
 0x100   :  { %v661_v28 = vsel %vm660_vm12, %v653_v50, %v655_v5  ;;  %v2065_v24 = vunpack.i.l.bf16 %v2064_v45  ;;  %v1876_v10 = vunpack.i.h.bf16 %v2565_v30  ;;  %v2066_v5 = vunpack.i.h.bf16 %v2064_v45 }
 0x101   :  { %1480 = vmatpush1.msra.mxu0 %v661_v28  ;;  %1721 = vmatprep.subr.bf16.mxu1 %v1720_v61  ;;  %v3096_v28 = vunpack.i.h.bf16 %v2567_v31 }
 0x102   :  { %1723 = vmatpush1.bf16.msra.mxu1 %v1722_v11  ;;  %1769 = vmatprep.subr.bf16.mxu0 %v1768_v47  ;;  %v718_v63 = vsel %vm88_vm2, %v1866_v9, %v2065_v24  ;;  %v719_v30 = vsel %vm88_vm2, %v2065_v24, %v2066_v5 }
 0x103   :  { %v2074_v18 = vpop.permute.xlu1 %2073  ;;  %v2069_v2 = vpop.permute.xlu0 %2068  ;;  %1496 = vmatmul.mubr.f32.vlgmr.msra.gmra.mrb[0].mxu0 %v2889_v34 }
 0x104   :  { %v2075_v1 = vunpack.i.l.bf16 %v2074_v18  ;;  %1771 = vmatpush1.bf16.msra.mxu0 %v1770_v23  ;;  %1671 = vmatprep.mubr.msk.f32.mxu0 %vm1427_vm0, %v2501_v13  ;;  %v2076_v49 = vunpack.i.h.bf16 %v2074_v18  ;;  %v2071_v17 = vunpack.i.h.bf16 %v2069_v2  ;;  %v2070_v12 = vunpack.i.l.bf16 %v2069_v2 }
 0x105   :  { %vm3105_vm0 = vcmask 703488  }
 0x106   :  { %v743_v47 = vsel %vm114_vm3, %v1876_v10, %v2075_v1  ;;  %v744_v61 = vsel %vm114_vm3, %v2075_v1, %v2076_v49  ;;  %v91_v13 = vsel %vm88_vm2, %v1865_v27, %v2071_v17  ;;  %v720_v23 = vsel %vm88_vm2, %v2066_v5, %v2070_v12  ;;  %vm3107_vm2 = vmmov %vm3105_vm0 }
 0x107   :  { %v2084_v40 = vpop.permute.xlu1 %2083  ;;  %v2079_v39 = vpop.permute.xlu0 %2078  ;;  %v1724_v56 = vpack.c.bf16 %v743_v47, %v718_v63  ;;  %v1896_v1 = vunpack.i.h.bf16 %v2604_v51  ;;  %v1891_v63 = vunpack.i.h.bf16 %v2606_v52  ;;  %v1774_v22 = vpack.c.bf16 %v744_v61, %v719_v30 }
 0x108   :  { %v2081_v0 = vunpack.i.h.bf16 %v2079_v39  ;;  %v2080_v50 = vunpack.i.l.bf16 %v2079_v39  ;;  %v2085_v45 = vunpack.i.l.bf16 %v2084_v40  ;;  %v2086_v27 = vunpack.i.h.bf16 %v2084_v40 }
 0x109   :  { %1725 = vmatprep.subr.bf16.mxu1 %v1724_v56  ;;  %v3097_v40 = vunpack.i.h.bf16 %v2588_v42 }
 0x10a   :  { %v117_v11 = vsel %vm114_vm3, %v3096_v28, %v2081_v0  ;;  %v745_v18 = vsel %vm114_vm3, %v2076_v49, %v2080_v50  ;;  %v768_v5 = vsel %vm140_vm4, %v1891_v63, %v2085_v45  ;;  %v769_v52 = vsel %vm140_vm4, %v2085_v45, %v2086_v27  ;;  %vm3108_vm3 = vmmov %vm3106_vm1 }
 0x10b   :  { %v2094_v2 = vpop.permute.xlu1 %2093  ;;  %v2089_v9 = vpop.permute.xlu0 %2088  ;;  %v1726_v10 = vpack.c.bf16 %v117_v11, %v91_v13  ;;  %v1772_v24 = vpack.c.bf16 %v745_v18, %v720_v23  ;;  %v3098_v28 = vunpack.i.h.bf16 %v2586_v41 }
 0x10c   :  { %v2095_v47 = vunpack.i.l.bf16 %v2094_v2  ;;  %v2096_v17 = vunpack.i.h.bf16 %v2094_v2  ;;  %v2091_v39 = vunpack.i.h.bf16 %v2089_v9  ;;  %v2090_v31 = vunpack.i.l.bf16 %v2089_v9 }
 0x10d   :  { %1727 = vmatpush1.bf16.msra.mxu1 %v1726_v10  ;;  %1773 = vmatprep.subr.bf16.mxu0 %v1772_v24  ;;  %v1916_v24 = vunpack.i.h.bf16 %v2634_v3 }
 0x10e   :  { %1775 = vmatpush1.bf16.msra.mxu0 %v1774_v22  ;;  %v793_v49 = vsel %vm166_vm5, %v1896_v1, %v2095_v47  ;;  %v794_v30 = vsel %vm166_vm5, %v2095_v47, %v2096_v17  ;;  %v143_v61 = vsel %vm140_vm4, %v3097_v40, %v2091_v39  ;;  %v770_v23 = vsel %vm140_vm4, %v2086_v27, %v2090_v31  ;;  %vm3110_vm4 = vmmov %vm3105_vm0 }
 0x10f   :  { %v2104_v12 = vpop.permute.xlu1 %2103  ;;  %v2099_v56 = vpop.permute.xlu0 %2098  ;;  %v1728_v0 = vpack.c.bf16 %v793_v49, %v768_v5  ;;  %v1911_v1 = vunpack.i.h.bf16 %v2636_v4  ;;  %v1778_v42 = vpack.c.bf16 %v794_v30, %v769_v52  ;;  %v3100_v52 = vunpack.i.h.bf16 %v2616_v58 }
 0x110   :  { %v2101_v50 = vunpack.i.h.bf16 %v2099_v56  ;;  %v2100_v51 = vunpack.i.l.bf16 %v2099_v56  ;;  %v2105_v13 = vunpack.i.l.bf16 %v2104_v12  ;;  %v2106_v22 = vunpack.i.h.bf16 %v2104_v12 }
 0x111   :  { %1729 = vmatprep.subr.bf16.mxu1 %v1728_v0  ;;  %v3099_v12 = vunpack.i.h.bf16 %v2618_v59 }
 0x112   :  { %v169_v11 = vsel %vm166_vm5, %v3098_v28, %v2101_v50  ;;  %v795_v18 = vsel %vm166_vm5, %v2096_v17, %v2100_v51  ;;  %v818_v27 = vsel %vm192_vm6, %v1911_v1, %v2105_v13  ;;  %v819_v4 = vsel %vm192_vm6, %v2105_v13, %v2106_v22  ;;  %vm3112_vm5 = vmmov %vm3106_vm1 }
 0x113   :  { %v2114_v2 = vpop.permute.xlu1 %2113  ;;  %v2109_v9 = vpop.permute.xlu0 %2108  ;;  %v1730_v10 = vpack.c.bf16 %v169_v11, %v143_v61  ;;  %v1776_v45 = vpack.c.bf16 %v795_v18, %v770_v23  ;;  %v1936_v18 = vunpack.i.h.bf16 %v2664_v35 }
 0x114   :  { %v2115_v63 = vunpack.i.l.bf16 %v2114_v2  ;;  %v2116_v47 = vunpack.i.h.bf16 %v2114_v2  ;;  %v2111_v39 = vunpack.i.h.bf16 %v2109_v9  ;;  %v2110_v41 = vunpack.i.l.bf16 %v2109_v9 }
 0x115   :  { %1731 = vmatpush1.bf16.msra.mxu1 %v1730_v10  ;;  %1777 = vmatprep.subr.bf16.mxu0 %v1776_v45  ;;  %v1931_v2 = vunpack.i.h.bf16 %v2666_v36 }
 0x116   :  { %1779 = vmatpush1.bf16.msra.mxu0 %v1778_v42  ;;  %v843_v17 = vsel %vm218_vm7, %v1916_v24, %v2115_v63  ;;  %v844_v0 = vsel %vm218_vm7, %v2115_v63, %v2116_v47  ;;  %v195_v50 = vsel %vm192_vm6, %v3099_v12, %v2111_v39  ;;  %v820_v40 = vsel %vm192_vm6, %v2106_v22, %v2110_v41  ;;  %vm3113_vm6 = vmmov %vm3105_vm0 }
 0x117   :  { %v2124_v31 = vpop.permute.xlu1 %2123  ;;  %v2119_v5 = vpop.permute.xlu0 %2118  ;;  %v1732_v49 = vpack.c.bf16 %v843_v17, %v818_v27  ;;  %v1782_v59 = vpack.c.bf16 %v844_v0, %v819_v4  ;;  %v3101_v27 = vunpack.i.h.bf16 %v2648_v20 }
 0x118   :  { %v2121_v56 = vunpack.i.h.bf16 %v2119_v5  ;;  %v2120_v3 = vunpack.i.l.bf16 %v2119_v5  ;;  %v2125_v51 = vunpack.i.l.bf16 %v2124_v31  ;;  %v2126_v10 = vunpack.i.h.bf16 %v2124_v31 }
 0x119   :  { %1733 = vmatprep.subr.bf16.mxu1 %v1732_v49  ;;  %v3102_v5 = vunpack.i.h.bf16 %v2646_v19 }
 0x11a   :  { %v221_v30 = vsel %vm218_vm7, %v3100_v52, %v2121_v56  ;;  %v845_v61 = vsel %vm218_vm7, %v2116_v47, %v2120_v3  ;;  %v868_v1 = vsel %vm244_vm8, %v1931_v2, %v2125_v51  ;;  %v869_v36 = vsel %vm244_vm8, %v2125_v51, %v2126_v10  ;;  %vm3114_vm7 = vmmov %vm3106_vm1 }
 0x11b   :  { %v2134_v28 = vpop.permute.xlu1 %2133  ;;  %v2129_v11 = vpop.permute.xlu0 %2128  ;;  %v1734_v23 = vpack.c.bf16 %v221_v30, %v195_v50  ;;  %v1780_v13 = vpack.c.bf16 %v845_v61, %v820_v40  ;;  %v1956_v51 = vunpack.i.h.bf16 %v2694_v57  ;;  %v1951_v52 = vunpack.i.h.bf16 %v2696_v60 }
 0x11c   :  { %v2135_v9 = vunpack.i.l.bf16 %v2134_v28  ;;  %v2136_v45 = vunpack.i.h.bf16 %v2134_v28  ;;  %v2131_v24 = vunpack.i.h.bf16 %v2129_v11  ;;  %v2130_v58 = vunpack.i.l.bf16 %v2129_v11 }
 0x11d   :  { %1735 = vmatpush1.bf16.msra.mxu1 %v1734_v23  ;;  %1781 = vmatprep.subr.bf16.mxu0 %v1780_v13 }
 0x11e   :  { %1783 = vmatpush1.bf16.msra.mxu0 %v1782_v59  ;;  %v893_v42 = vsel %vm270_vm9, %v1936_v18, %v2135_v9  ;;  %v894_v41 = vsel %vm270_vm9, %v2135_v9, %v2136_v45  ;;  %v247_v17 = vsel %vm244_vm8, %v3101_v27, %v2131_v24  ;;  %v870_v56 = vsel %vm244_vm8, %v2126_v10, %v2130_v58 }
 0x11f   :  { %v2144_v63 = vpop.permute.xlu1 %2143  ;;  %v2139_v22 = vpop.permute.xlu0 %2138  ;;  %v1736_v47 = vpack.c.bf16 %v893_v42, %v868_v1  ;;  %v1786_v20 = vpack.c.bf16 %v894_v41, %v869_v36  ;;  %v3103_v10 = vunpack.i.h.bf16 %v2678_v46  ;;  %v3104_v58 = vunpack.i.h.bf16 %v2676_v44 }
 0x120   :  { %v2141_v39 = vunpack.i.h.bf16 %v2139_v22  ;;  %v2140_v35 = vunpack.i.l.bf16 %v2139_v22  ;;  %v2145_v31 = vunpack.i.l.bf16 %v2144_v63  ;;  %v2146_v40 = vunpack.i.h.bf16 %v2144_v63 }
 0x121   :  { %1737 = vmatprep.subr.bf16.mxu1 %v1736_v47  ;;  %v1976_v36 = vunpack.i.h.bf16 %v2724_v37  ;;  %v1971_v41 = vunpack.i.h.bf16 %v2726_v38  ;;  %vm3115_vm8 = vcmask 687104  }
 0x122   :  { %v273_v49 = vsel %vm270_vm9, %v3102_v5, %v2141_v39  ;;  %v895_v3 = vsel %vm270_vm9, %v2136_v45, %v2140_v35  ;;  %v918_v11 = vsel %vm296_vm10, %v1951_v52, %v2145_v31  ;;  %v919_v60 = vsel %vm296_vm10, %v2145_v31, %v2146_v40 }
 0x123   :  { %v2154_v4 = vpop.permute.xlu1 %2153  ;;  %v2149_v0 = vpop.permute.xlu0 %2148  ;;  %v1738_v12 = vpack.c.bf16 %v273_v49, %v247_v17  ;;  %v1784_v50 = vpack.c.bf16 %v895_v3, %v870_v56  ;;  %vm3116_vm9 = vcmask 556032  }
 0x124   :  { %v2155_v30 = vunpack.i.l.bf16 %v2154_v4  ;;  %v2156_v61 = vunpack.i.h.bf16 %v2154_v4  ;;  %v2151_v28 = vunpack.i.h.bf16 %v2149_v0  ;;  %v2150_v19 = vunpack.i.l.bf16 %v2149_v0 }
 0x125   :  { %1739 = vmatpush1.bf16.msra.mxu1 %v1738_v12  ;;  %1785 = vmatprep.subr.bf16.mxu0 %v1784_v50 }
 0x126   :  { %1787 = vmatpush1.bf16.msra.mxu0 %v1786_v20  ;;  %v943_v23 = vsel %vm322_vm11, %v1956_v51, %v2155_v30  ;;  %v944_v9 = vsel %vm322_vm11, %v2155_v30, %v2156_v61  ;;  %v299_v45 = vsel %vm296_vm10, %v3103_v10, %v2151_v28  ;;  %v920_v42 = vsel %vm296_vm10, %v2146_v40, %v2150_v19  ;;  %vm3117_vm10 = vmmov %vm3115_vm8 }
 0x127   :  { %v2164_v13 = vpop.permute.xlu1 %2163  ;;  %v2159_v18 = vpop.permute.xlu0 %2158  ;;  %v1740_v2 = vpack.c.bf16 %v943_v23, %v918_v11  ;;  %v1790_v46 = vpack.c.bf16 %v944_v9, %v919_v60  ;;  %v3109_v51 = vunpack.i.h.bf16 %v2708_v8  ;;  %v3111_v30 = vunpack.i.h.bf16 %v2706_v7 }
 0x128   :  { %v2161_v59 = vunpack.i.h.bf16 %v2159_v18  ;;  %v2160_v57 = vunpack.i.l.bf16 %v2159_v18  ;;  %v2165_v24 = vunpack.i.l.bf16 %v2164_v13  ;;  %v2166_v17 = vunpack.i.h.bf16 %v2164_v13 }
 0x129   :  { %1741 = vmatprep.subr.bf16.mxu1 %v1740_v2  ;;  %v1996_v18 = vunpack.i.h.bf16 %v2756_v21  ;;  %v1991_v2 = vunpack.i.h.bf16 %v2758_v29 }
 0x12a   :  { %v325_v1 = vsel %vm322_vm11, %v3104_v58, %v2161_v59  ;;  %v945_v63 = vsel %vm322_vm11, %v2156_v61, %v2160_v57  ;;  %v968_v49 = vsel %vm3105_vm0, %v1971_v41, %v2165_v24  ;;  %v969_v38 = vsel %vm3107_vm2, %v2165_v24, %v2166_v17  ;;  %vm3118_vm11 = vmmov %vm3116_vm9 }
 0x12b   :  { %v2174_v22 = vpop.permute.xlu1 %2173  ;;  %v2169_v47 = vpop.permute.xlu0 %2168  ;;  %v1742_v39 = vpack.c.bf16 %v325_v1, %v299_v45  ;;  %v1788_v35 = vpack.c.bf16 %v945_v63, %v920_v42  ;;  %vm3120_vm0 = vmmov %vm3115_vm8 }
 0x12c   :  { %v2175_v27 = vunpack.i.l.bf16 %v2174_v22  ;;  %v2176_v31 = vunpack.i.h.bf16 %v2174_v22  ;;  %v2171_v5 = vunpack.i.h.bf16 %v2169_v47  ;;  %v2170_v44 = vunpack.i.l.bf16 %v2169_v47  ;;  %vm3123_vm2 = vmmov %vm3120_vm0 }
 0x12d   :  { %1743 = vmatpush1.bf16.msra.mxu1 %v1742_v39  ;;  %1789 = vmatprep.subr.bf16.mxu0 %v1788_v35  ;;  %v3119_v22 = vunpack.i.h.bf16 %v2738_v55  ;;  %v3121_v35 = vunpack.i.h.bf16 %v2736_v54 }
 0x12e   :  { %1791 = vmatpush1.bf16.msra.mxu0 %v1790_v46  ;;  %v993_v56 = vsel %vm3106_vm1, %v1976_v36, %v2175_v27  ;;  %v994_v50 = vsel %vm3108_vm3, %v2175_v27, %v2176_v31  ;;  %v351_v52 = vsel %vm3110_vm4, %v3109_v51, %v2171_v5  ;;  %v970_v61 = vsel %vm3113_vm6, %v2166_v17, %v2170_v44  ;;  %vm3122_vm1 = vmmov %vm3116_vm9 }
 0x12f   :  { %v2184_v3 = vpop.permute.xlu1 %2183  ;;  %v2179_v4 = vpop.permute.xlu0 %2178  ;;  %v1744_v0 = vpack.c.bf16 %v993_v56, %v968_v49  ;;  %v1794_v8 = vpack.c.bf16 %v994_v50, %v969_v38  ;;  %vm3124_vm3 = vmmov %vm3122_vm1  ;;  %v2016_v44 = vunpack.i.h.bf16 %v2787_v32  ;;  %v2011_v49 = vunpack.i.h.bf16 %v2789_v15 }
 0x130   :  { %v2181_v12 = vunpack.i.h.bf16 %v2179_v4  ;;  %v2180_v37 = vunpack.i.l.bf16 %v2179_v4  ;;  %v2185_v20 = vunpack.i.l.bf16 %v2184_v3  ;;  %v2186_v57 = vunpack.i.h.bf16 %v2184_v3 }
 0x131   :  { %1745 = vmatprep.subr.bf16.mxu1 %v1744_v0  ;;  %vm3125_vm4 = vcmask 547840  }
 0x132   :  { %v377_v40 = vsel %vm3112_vm5, %v3111_v30, %v2181_v12  ;;  %v995_v28 = vsel %vm3114_vm7, %v2176_v31, %v2180_v37  ;;  %v1018_v10 = vsel %vm3115_vm8, %v1991_v2, %v2185_v20  ;;  %v1019_v29 = vsel %vm3117_vm10, %v2185_v20, %v2186_v57  ;;  %vm3127_vm6 = vmmov %vm3125_vm4 }
 0x133   :  { %v2194_v19 = vpop.permute.xlu1 %2193  ;;  %v2189_v11 = vpop.permute.xlu0 %2188  ;;  %v1746_v23 = vpack.c.bf16 %v377_v40, %v351_v52  ;;  %v1792_v13 = vpack.c.bf16 %v995_v28, %v970_v61  ;;  %vm3126_vm5 = vcmask 539648   ;;  %v3129_v30 = vunpack.i.h.bf16 %v2772_v48  ;;  %vm3130_vm8 = vmmov %vm3125_vm4 }
 0x134   :  { %v2195_v59 = vunpack.i.l.bf16 %v2194_v19  ;;  %v2196_v60 = vunpack.i.h.bf16 %v2194_v19  ;;  %v2191_v9 = vunpack.i.h.bf16 %v2189_v11  ;;  %v2190_v7 = vunpack.i.l.bf16 %v2189_v11  ;;  %vm3128_vm7 = vmmov %vm3126_vm5 }
 0x135   :  { %1747 = vmatpush1.bf16.msra.mxu1 %v1746_v23  ;;  %1793 = vmatprep.subr.bf16.mxu0 %v1792_v13  ;;  %v3131_v28 = vunpack.i.h.bf16 %v2770_v43  ;;  %vm3133_vm10 = vmmov %vm3125_vm4  ;;  %v2031_v13 = vunpack.i.h.bf16 %v2818_v6 }
 0x136   :  { %1795 = vmatpush1.bf16.msra.mxu0 %v1794_v8  ;;  %v1043_v45 = vsel %vm3116_vm9, %v1996_v18, %v2195_v59  ;;  %v1044_v63 = vsel %vm3118_vm11, %v2195_v59, %v2196_v60  ;;  %v403_v47 = vsel %vm3120_vm0, %v3119_v22, %v2191_v9  ;;  %v1020_v41 = vsel %vm3123_vm2, %v2186_v57, %v2190_v7  ;;  %vm3132_vm9 = vmmov %vm3126_vm5 }
 0x137   :  { %v2204_v24 = vpop.permute.xlu1 %2203  ;;  %v2199_v58 = vpop.permute.xlu0 %2198  ;;  %v1748_v1 = vpack.c.bf16 %v1043_v45, %v1018_v10  ;;  %v1798_v55 = vpack.c.bf16 %v1044_v63, %v1019_v29  ;;  %vm3134_vm11 = vmmov %vm3126_vm5  ;;  %vm3135_vm0 = vcmask 531456  }
 0x138   :  { %v2201_v42 = vunpack.i.h.bf16 %v2199_v58  ;;  %v2200_v21 = vunpack.i.l.bf16 %v2199_v58  ;;  %v2205_v39 = vunpack.i.l.bf16 %v2204_v24  ;;  %v2206_v3 = vunpack.i.h.bf16 %v2204_v24  ;;  %vm3138_vm2 = vmmov %vm3135_vm0 }
 0x139   :  { %1749 = vmatprep.subr.bf16.mxu1 %v1748_v1  ;;  %v3137_v1 = vunpack.i.h.bf16 %v2802_v16 }
 0x13a   :  { %v429_v36 = vsel %vm3122_vm1, %v3121_v35, %v2201_v42  ;;  %v1045_v46 = vsel %vm3124_vm3, %v2196_v60, %v2200_v21  ;;  %v1068_v12 = vsel %vm3125_vm4, %v2011_v49, %v2205_v39  ;;  %v1069_v15 = vsel %vm3127_vm6, %v2205_v39, %v2206_v3  ;;  %vm3141_vm4 = vmmov %vm3135_vm0 }
 0x13b   :  { %v2214_v27 = vpop.permute.xlu1 %2213  ;;  %v2209_v17 = vpop.permute.xlu0 %2208  ;;  %v1750_v31 = vpack.c.bf16 %v429_v36, %v403_v47  ;;  %v1796_v5 = vpack.c.bf16 %v1045_v46, %v1020_v41  ;;  %vm3136_vm1 = vcmask 523264   ;;  %v3139_v21 = vunpack.i.h.bf16 %v2800_v62  ;;  %vm3143_vm6 = vmmov %vm3135_vm0 }
 0x13c   :  { %v2215_v56 = vunpack.i.l.bf16 %v2214_v27  ;;  %v2216_v4 = vunpack.i.h.bf16 %v2214_v27  ;;  %v2211_v0 = vunpack.i.h.bf16 %v2209_v17  ;;  %v2210_v54 = vunpack.i.l.bf16 %v2209_v17  ;;  %vm3140_vm3 = vmmov %vm3136_vm1 }
 0x13d   :  { %1751 = vmatpush1.bf16.msra.mxu1 %v1750_v31  ;;  %1797 = vmatprep.subr.bf16.mxu0 %v1796_v5 }
 0x13e   :  { %1799 = vmatpush1.bf16.msra.mxu0 %v1798_v55  ;;  %v1093_v37 = vsel %vm3126_vm5, %v2016_v44, %v2215_v56  ;;  %v1094_v20 = vsel %vm3128_vm7, %v2215_v56, %v2216_v4  ;;  %v455_v40 = vsel %vm3130_vm8, %v3129_v30, %v2211_v0  ;;  %v1070_v11 = vsel %vm3133_vm10, %v2206_v3, %v2210_v54  ;;  %vm3142_vm5 = vmmov %vm3136_vm1 }
 0x13f   :  { %v2224_v38 = vpop.permute.xlu1 %2223  ;;  %v2219_v50 = vpop.permute.xlu0 %2218  ;;  %v1752_v51 = vpack.c.bf16 %v1093_v37, %v1068_v12  ;;  %v1802_v57 = vpack.c.bf16 %v1094_v20, %v1069_v15  ;;  %vm3144_vm7 = vmmov %vm3136_vm1  ;;  %vm3145_vm8 = vcmask 384000  }
 0x140   :  { %v2221_v52 = vunpack.i.h.bf16 %v2219_v50  ;;  %v2220_v32 = vunpack.i.l.bf16 %v2219_v50  ;;  %v2225_v61 = vunpack.i.l.bf16 %v2224_v38  ;;  %v2226_v7 = vunpack.i.h.bf16 %v2224_v38  ;;  %vm3147_vm10 = vmmov %vm3145_vm8 }
 0x141   :  { %1753 = vmatprep.subr.bf16.mxu1 %v1752_v51 }
 0x142   :  { %v481_v19 = vsel %vm3132_vm9, %v3131_v28, %v2221_v52  ;;  %v1095_v23 = vsel %vm3134_vm11, %v2216_v4, %v2220_v32  ;;  %v1118_v10 = vsel %vm3135_vm0, %v2031_v13, %v2225_v61  ;;  %v1119_v39 = vsel %vm3141_vm4, %v2225_v61, %v2226_v7  ;;  %vm3146_vm9 = vmmov %vm3145_vm8 }
 0x143   :  { %v2234_v18 = vpop.permute.xlu1 %2233  ;;  %v2229_v2 = vpop.permute.xlu0 %2228  ;;  %v1754_v8 = vpack.c.bf16 %v481_v19, %v455_v40  ;;  %v1800_v59 = vpack.c.bf16 %v1095_v23, %v1070_v11  ;;  %v3148_v40 = vunpack.i.h.bf16 %v2826_v26  ;;  %vm3149_vm11 = vmmov %vm3145_vm8  ;;  %v3150_v28 = vunpack.i.h.bf16 %v2828_v53 }
 0x144   :  { %v2236_v60 = vunpack.i.h.bf16 %v2234_v18  ;;  %v2235_v48 = vunpack.i.l.bf16 %v2234_v18  ;;  %v2231_v9 = vunpack.i.h.bf16 %v2229_v2  ;;  %v2230_v43 = vunpack.i.l.bf16 %v2229_v2 }
 0x145   :  { %1755 = vmatpush1.bf16.msra.mxu1 %v1754_v8  ;;  %1801 = vmatprep.subr.bf16.mxu0 %v1800_v59 }
 0x146   :  { %1803 = vmatpush1.bf16.msra.mxu0 %v1802_v57  ;;  %v1143_v45 = vsel %vm3136_vm1, %v2235_v48, %v2236_v60  ;;  %v507_v42 = vsel %vm3138_vm2, %v3137_v1, %v2231_v9  ;;  %v1120_v36 = vsel %vm3143_vm6, %v2226_v7, %v2230_v43 }
 0x147   :  { %v529_v24 = vpop.permute.xlu1 %528  ;;  %v2239_v58 = vpop.permute.xlu0 %2238  ;;  %v1756_v6 = vpack.c.bf16 %v1143_v45, %v1118_v10 }
 0x148   :  { %v533_v29 = vsel %vm3140_vm3, %v3139_v21, %v529_v24  ;;  %v2241_v63 = vunpack.i.h.bf16 %v2239_v58  ;;  %v2240_v22 = vunpack.i.l.bf16 %v2239_v58 }
 0x149   :  { %v1758_v47 = vpack.c.bf16 %v533_v29, %v507_v42  ;;  %1757 = vmatprep.subr.bf16.mxu1 %v1756_v6 }
 0x14a   :  { %v1144_v35 = vsel %vm3142_vm5, %v2236_v60, %v2240_v22  ;;  %v1145_v41 = vsel %vm3144_vm7, %v2240_v22, %v2241_v63  ;;  %v3151_v63 = vunpack.i.h.bf16 %v2849_v14 }
 0x14b   :  { %v1806_v46 = vpack.c.bf16 %v1144_v35, %v1119_v39  ;;  %v2249_v16 = vpop.permute.xlu1 %2248  ;;  %v2244_v27 = vpop.permute.xlu0 %2243  ;;  %1759 = vmatpush1.bf16.msra.mxu1 %v1758_v47  ;;  %v1804_v17 = vpack.c.bf16 %v1145_v41, %v1120_v36  ;;  %v3152_v47 = vunpack.i.h.bf16 %v2851_v33 }
 0x14c   :  { %v2251_v62 = vunpack.i.h.bf16 %v2249_v16  ;;  %v2250_v31 = vunpack.i.l.bf16 %v2249_v16  ;;  %v2246_v5 = vunpack.i.h.bf16 %v2244_v27  ;;  %v2245_v44 = vunpack.i.l.bf16 %v2244_v27 }
 0x14d   :  { %1805 = vmatprep.subr.bf16.mxu0 %v1804_v17 }
 0x14e   :  { %1807 = vmatpush1.bf16.msra.mxu0 %v1806_v46  ;;  %v1170_v56 = vsel %vm556_vm13, %v2250_v31, %v2251_v62  ;;  %v1169_v12 = vsel %vm556_vm13, %v2246_v5, %v2250_v31  ;;  %v1168_v38 = vsel %vm556_vm13, %v2245_v44, %v2246_v5 }
 0x14f   :  { %v2259_v49 = vpop.permute.xlu1 %2258  ;;  %v2254_v55 = vpop.permute.xlu0 %2253 }
 0x150   :  { %v2261_v3 = vunpack.i.h.bf16 %v2259_v49  ;;  %v2260_v4 = vunpack.i.l.bf16 %v2259_v49  ;;  %v2256_v0 = vunpack.i.h.bf16 %v2254_v55  ;;  %v2255_v54 = vunpack.i.l.bf16 %v2254_v55 }
 0x152   :  { %v1194_v37 = vsel %vm3145_vm8, %v2256_v0, %v2260_v4  ;;  %v1193_v50 = vsel %vm3146_vm9, %v2255_v54, %v2256_v0  ;;  %v1195_v51 = vsel %vm3147_vm10, %v2260_v4, %v2261_v3 }
 0x153   :  { %v1810_v52 = vpack.c.bf16 %v1194_v37, %v1169_v12  ;;  %v581_v32 = vpop.permute.xlu1 %580  ;;  %v555_v15 = vpop.permute.xlu0 %554  ;;  %v1760_v20 = vpack.c.bf16 %v1193_v50, %v1168_v38  ;;  %v1808_v30 = vpack.c.bf16 %v1195_v51, %v1170_v56 }
 0x154   :  { %v585_v61 = vsel %vm3149_vm11, %v3148_v40, %v581_v32  ;;  %v559_v19 = vsel %vm556_vm13, %v3150_v28, %v555_v15 }
 0x155   :  { %v1762_v11 = vpack.c.bf16 %v585_v61, %v559_v19  ;;  %1761 = vmatprep.subr.bf16.mxu1 %v1760_v20  ;;  %1809 = vmatprep.subr.bf16.mxu0 %v1808_v30 }
 0x156   :  { %1811 = vmatpush1.bf16.msra.mxu0 %v1810_v52 }
 0x157   :  { %v2269_v23 = vpop.permute.xlu1 %2268  ;;  %v2264_v13 = vpop.permute.xlu0 %2263  ;;  %1763 = vmatpush1.bf16.msra.mxu1 %v1762_v11 }
 0x158   :  { %v2271_v18 = vunpack.i.h.bf16 %v2269_v23  ;;  %v2270_v2 = vunpack.i.l.bf16 %v2269_v23  ;;  %v2266_v8 = vunpack.i.h.bf16 %v2264_v13  ;;  %v2265_v59 = vunpack.i.l.bf16 %v2264_v13 }
 0x15a   :  { %v1220_v26 = vsel %vm608_vm14, %v2270_v2, %v2271_v18  ;;  %v1219_v43 = vsel %vm608_vm14, %v2266_v8, %v2270_v2  ;;  %v1218_v45 = vsel %vm608_vm14, %v2265_v59, %v2266_v8 }
 0x15b   :  { %v2279_v57 = vpop.permute.xlu1 %2278  ;;  %v2274_v60 = vpop.permute.xlu0 %2273 }
 0x15c   :  { %v2281_v48 = vunpack.i.h.bf16 %v2279_v57  ;;  %v2280_v9 = vunpack.i.l.bf16 %v2279_v57  ;;  %v2276_v53 = vunpack.i.h.bf16 %v2274_v60  ;;  %v2275_v7 = vunpack.i.l.bf16 %v2274_v60 }
 0x15e   :  { %v1244_v10 = vsel %vm634_vm15, %v2276_v53, %v2280_v9  ;;  %v1243_v24 = vsel %vm634_vm15, %v2275_v7, %v2276_v53  ;;  %v1245_v58 = vsel %vm634_vm15, %v2280_v9, %v2281_v48 }
 0x15f   :  { %v1814_v6 = vpack.c.bf16 %v1244_v10, %v1219_v43  ;;  %v633_v1 = vpop.permute.xlu1 %632  ;;  %v607_v42 = vpop.permute.xlu0 %606  ;;  %v1764_v21 = vpack.c.bf16 %v1243_v24, %v1218_v45  ;;  %v1812_v29 = vpack.c.bf16 %v1245_v58, %v1220_v26 }
 0x160   :  { %v637_v22 = vsel %vm634_vm15, %v3151_v63, %v633_v1  ;;  %v611_v39 = vsel %vm608_vm14, %v3152_v47, %v607_v42 }
 0x161   :  { %v1766_v35 = vpack.c.bf16 %v637_v22, %v611_v39  ;;  %1765 = vmatprep.subr.bf16.mxu1 %v1764_v21  ;;  %1813 = vmatprep.subr.bf16.mxu0 %v1812_v29 }
 0x162   :  { %1815 = vmatpush1.bf16.msra.mxu0 %v1814_v6 }
 0x163   :  { %v1263_v36 = vpop.permute.xlu1 %1262  ;;  %v1261_v41 = vpop.permute.xlu0 %1260  ;;  %1767 = vmatpush1.bf16.msra.mxu1 %v1766_v35 }
 0x164   :  { %v1268_v46 = vsel %vm660_vm12, %v1261_v41, %v1263_v36 }
 0x165   :  { %1550 = vmatprep.subr.mxu1 %v1268_v46 }
 0x167   :  { %v1267_v16 = vpop.permute.xlu1 %1266  ;;  %v1265_v27 = vpop.permute.xlu0 %1264 }
 0x168   :  { %v1269_v14 = vsel %vm660_vm12, %v1263_v36, %v1265_v27  ;;  %v1270_v17 = vsel %vm660_vm12, %v1265_v27, %v1267_v16 }
 0x169   :  { %1621 = vmatprep.subr.mxu0 %v1270_v17 }
 0x16a   :  { %1622 = vmatpush1.msra.mxu0 %v1269_v14 }
 0x16b   :  { %v659_v33 = vpop.permute.xlu0 %658  ;;  %1638 = vmatmul.mubr.f32.vlgmr.msra.gmra.mrb[2].mxu0 %v2889_v34 }
 0x16c   :  { %v663_v62 = vsel %vm660_vm12, %v2873_v25, %v659_v33 }
 0x16d   :  { %1551 = vmatpush1.msra.mxu1 %v663_v62 }
 0x16e   :  { %1567 = vmatmul.mubr.f32.vlgmr.msra.gmra.mrb[0].mxu1 %v2889_v34 }
 0x1d6   :  { %v1497_v31 = vpop.f32.mrb[0].mxu0 }
 0x1d7   :  { %1644 = vst [vmem:[#allocation8] sm:$0xff] %v1497_v31  ;;  %v1499_v5 = vpop.f32.mrb[1].mxu0 }
 0x1d8   :  { %1645 = vst [vmem:[#allocation8 + $0x8] sm:$0xff] %v1499_v5 }
 0x23e   :  { %v1639_v44 = vpop.f32.mrb[2].mxu0 }
 0x23f   :  { %1649 = vst [vmem:[#allocation8 + $0x20] sm:$0xff] %v1639_v44  ;;  %v1641_v49 = vpop.f32.mrb[3].mxu0 }
 0x240   :  { %1650 = vst [vmem:[#allocation8 + $0x28] sm:$0xff] %v1641_v49 }
 0x241   :  { %v1568_v55 = vpop.f32.mrb[0].mxu1 }
 0x242   :  { %1646 = vst [vmem:[#allocation8 + $0x10] sm:$0xff] %v1568_v55  ;;  %v1570_v56 = vpop.f32.mrb[1].mxu1 }
 0x243   :  { %1648 = vst [vmem:[#allocation8 + $0x18] sm:$0xff] %v1570_v56 }
 0x244   :  { %2337 = shalt.err (!%p2334_p6)
}
 0x245   :  { %s2338_s5 = scalar_lea.hbm %s3065_s2, 768 }
 0x246   :  { %p2339_p7 = scmp.ne.s32.totalorder %s3065_s2, %s2338_s5  ;;  %p2342_p8 = scmp.lt.u32.totalorder %s2338_s5, %s3065_s2 }
 0x248   :  { %p2344_p9 = pnand %p2342_p8, %p2339_p7 }
 0x24a   :  { %2347 = shalt.err (!%p2344_p9)
}
 0x24b   :  { %s2383_s9 = smov 384   ;;  %s2384_s10 = smov 24  }
 0x24c   :  { %1662 = dma.vmem_to_hbm [thread:$0]  %s1657_s30, 768, %s3065_s2, [#allocation5], %s2383_s9, %s2383_s9, %s2384_s10  }
 0x24d   :  { %2352 = dma.done.wait [#allocation5], 768  }
 0x24e   :  { %2353 = vsyncadd [#allocation5], 4294966528 }
 0x24f   :  { %1666 = vsyncpa [#allocation4], 1 }
 0x250   :  { %1667 = vsyncpa [#allocation7], 1 }
 0x251   :  { %1668 = vsyncpa [#allocation5], 1 }

</bundles_post_ra>
